<compile_context>
chip_gen: v7x
topology: tpu7x:2x2x1
jax: 0.10.0
libtpu: 0.0.40
codegen_flags: <defaults>
</compile_context>

<pallas_src>
import functools

import jax
import jax.numpy as jnp
from jax import lax
from jax.experimental import pallas as pl
from jax.experimental.pallas import tpu as pltpu


def _elu(x):
    """ELU, alpha=1.0 (torch.nn.ELU default)."""
    # TODO(synk): torch uses expm1 for the negative branch; exp(x)-1 differs by
    # < 1e-7 at f32 for these magnitudes and its Mosaic lowering is proven.
    return jnp.where(x > 0, x, jnp.exp(x) - 1.0)


# --------------------------------------------------------------------------- #
# Kernel
# --------------------------------------------------------------------------- #
def tcn_block_kernel(x_ref, w1_ref, t1_ref, w2_ref, t2_ref, o_ref,
                     pad1_ref, pad2_ref, *, K, d, T, fold, groups, mxu_dtype):
    """Processes one (fold*groups, C, T) batch block in natural layout.

    x_ref   : (fold*groups, C, T)  input block (natural (N, C, T) layout)
    w*_ref  : (C, K*C)             conv weights, tap-major, BN scale folded in
    t*_ref  : (C, 1)               folded shift = beta + (conv_bias - mean)*scale
    o_ref   : (fold*groups, C, T)
    pad*_ref: (C, fold*(T+P))      VMEM staging slabs, per-segment causal pad

    Per group, `fold` batch elements are staged into pad1 as
        [0_P, x_0, 0_P, x_1, ..., 0_P, x_{fold-1}]
    so every conv tap k is ONE contiguous vector load pad[:, k*d : k*d+ncols]
    and the K taps stack along sublanes into a single (K*C, ncols) operand for
    one MXU matmul with a K*C-deep contraction.  The P zeros in front of each
    segment keep the convolution causal across segment boundaries; the (fold-1)
    "don't-care" output columns that land on those pad strips are re-zeroed
    before they feed conv2 and are never stored.
    """
    C = w1_ref.shape[0]
    P = (K - 1) * d
    Tp = T + P
    ncols = fold * Tp - P            # matmul output columns per group
    f32 = jnp.float32

    w1 = w1_ref[...]
    w2 = w2_ref[...]
    t1 = t1_ref[...]
    t2 = t2_ref[...]
    zpad = jnp.zeros((C, P), mxu_dtype) if P > 0 else None

    def taps(ref):
        # K causally shifted views, read straight from VMEM (vector loads, not
        # XLU rotates) and stacked along sublanes -> (K*C, ncols).
        return jnp.concatenate(
            [ref[:, k * d:k * d + ncols] for k in range(K)], axis=0)

    for grp in range(groups):
        s0 = grp * fold

        # -- stage x: per-segment causal left pad + data ----------------------
        for j in range(fold):
            if P > 0:
                pad1_ref[:, j * Tp:j * Tp + P] = zpad
            pad1_ref[:, j * Tp + P:(j + 1) * Tp] = x_ref[s0 + j].astype(mxu_dtype)

        # -- conv1 (+BN1 scale in w1) as one K*C-deep MXU matmul --------------
        h1 = _elu(jnp.dot(w1, taps(pad1_ref), preferred_element_type=f32) + t1)
        # [dropout1 = identity in eval]

        # -- stage h1 for conv2: its don't-care columns land exactly on the
        #    pad strips of segments 1..fold-1 and are re-zeroed ---------------
        pad2_ref[:, P:P + ncols] = h1.astype(mxu_dtype)
        if P > 0:
            for j in range(fold):
                pad2_ref[:, j * Tp:j * Tp + P] = zpad

        # -- conv2 (+BN2 scale in w2) ------------------------------------------
        h2 = _elu(jnp.dot(w2, taps(pad2_ref), preferred_element_type=f32) + t2)
        # [dropout2 = identity in eval]

        # -- residual + final ELU, store each (C, T) tile ----------------------
        for j in range(fold):
            y = _elu(x_ref[s0 + j].astype(f32) + h2[:, j * Tp:j * Tp + T])
            o_ref[s0 + j] = y.astype(o_ref.dtype)


# --------------------------------------------------------------------------- #
# Blocking heuristic
# --------------------------------------------------------------------------- #
def _choose_blocking(N, C, T, itemsize, *, target_lanes=256, max_lanes=512,
                     min_block_bytes=128 * 1024, max_block_bytes=1 << 20,
                     max_batch_block=64):
    """Pick (fold, groups).

    fold   : batch elements packed into the lane axis of one MXU matmul —
             smallest divisor of N reaching ~target_lanes lanes (capped so the
             (K*C, lanes) im2col operand stays register/VMEM friendly).  The
             old "keep >= 2 grid steps" constraint is gone: one wide slab per
             step is strictly better on single-TC v5e/v6e, and realistic N
             still leaves several steps for v7x megacore.
    groups : independent folds processed per grid step, grown until the block
             reaches ~min_block_bytes (amortises the ~0.35 us per-step cost)
             while staying under max_block_bytes (v7x VMEM budget) and a
             modest unroll cap.
    """
    divisors = [b for b in range(1, N + 1) if N % b == 0]

    fold = 1
    for b in divisors:
        if b > 1 and (b * T > max_lanes or b > max_batch_block):
            break
        fold = b
        if b * T >= target_lanes:
            break

    bpe = C * T * itemsize           # bytes per batch element (input block)
    groups = 1
    for btot in divisors:
        if btot % fold:
            continue
        g = btot // fold
        if btot > max_batch_block or btot * bpe > max_block_bytes:
            break
        groups = g
        if btot * bpe >= min_block_bytes:
            break
    return fold, groups


# --------------------------------------------------------------------------- #
# Wrapper
# --------------------------------------------------------------------------- #
def tcn_block_pallas(x, W1, b1, bn1, W2, b2, bn2, *, kernel_length=4,
                     dilation=1, eps=1e-3, compute_dtype=jnp.bfloat16,
                     fold=None, groups=None):
    """Eval-mode TCNBlock forward.

    x  : (N, C, T) float32,  W* : (C, C, K) PyTorch OIH layout,  b* : (C,)
    bn* = (gamma, beta, running_mean, running_var), each (C,)
    compute_dtype: dtype of the MXU operands.  bf16 is the default on all
    generations (the v5e MXU is bf16-native too); accumulation, BN shift, ELU
    and the residual always run in f32.  Pass jnp.float32 for bit-faithful
    f32 module semantics.
    """
    N, C, T = x.shape
    K, d = kernel_length, dilation
    assert W1.shape == (C, C, K) and W2.shape == (C, C, K)
    assert C % 8 == 0, "channel count must be a multiple of 8 (sublane tiling)"

    if fold is None or groups is None:
        f_auto, g_auto = _choose_blocking(N, C, T, jnp.dtype(x.dtype).itemsize)
        fold = f_auto if fold is None else fold
        groups = g_auto if groups is None else groups
    bblk = fold * groups
    assert N % bblk == 0, "fold*groups must divide the batch size"
    G = N // bblk

    P = (K - 1) * d
    L = fold * (T + P)               # staging-slab lane width
    KC = K * C

    # Fold BN (eval running stats) + conv bias into a per-output-channel scale
    # (baked into the weights) and a shift (added in the kernel).
    def fold_bn(gamma, beta, mean, var, bias):
        s = (gamma / jnp.sqrt(var + eps)).astype(jnp.float32)
        t = (beta + (bias - mean) * s).astype(jnp.float32)
        return s, t

    s1, t1 = fold_bn(*bn1, b1)
    s2, t2 = fold_bn(*bn2, b2)

    # (C_out, C_in, K) -> (C_out, K*C_in), tap-major: Wf[o, k*C + i] = W[o,i,k]
    def flatten_w(W, s):
        Wf = jnp.transpose(W.astype(jnp.float32), (0, 2, 1)).reshape(C, KC)
        return (Wf * s[:, None]).astype(compute_dtype)

    W1f, W2f = flatten_w(W1, s1), flatten_w(W2, s2)
    t1, t2 = t1.reshape(C, 1), t2.reshape(C, 1)

    kernel = functools.partial(tcn_block_kernel, K=K, d=d, T=T, fold=fold,
                               groups=groups, mxu_dtype=compute_dtype)

    return pl.pallas_call(
        kernel,
        out_shape=jax.ShapeDtypeStruct((N, C, T), x.dtype),
        grid_spec=pltpu.PrefetchScalarGridSpec(
            num_scalar_prefetch=0,
            grid=(G,),
            in_specs=[
                # natural (N, C, T) layout — no wrapper-side HBM transpose
                pl.BlockSpec((bblk, C, T), lambda g: (g, 0, 0)),
                # weights/shifts: constant index maps -> not re-fetched across
                # steps (single-buffering them is a further minor VMEM saving)
                pl.BlockSpec((C, KC), lambda g: (0, 0)),   # W1 (BN1-scaled)
                pl.BlockSpec((C, 1), lambda g: (0, 0)),    # t1
                pl.BlockSpec((C, KC), lambda g: (0, 0)),   # W2 (BN2-scaled)
                pl.BlockSpec((C, 1), lambda g: (0, 0)),    # t2
            ],
            out_specs=pl.BlockSpec((bblk, C, T), lambda g: (g, 0, 0)),
            scratch_shapes=[
                pltpu.VMEM((C, L), compute_dtype),   # pad1: staged x
                pltpu.VMEM((C, L), compute_dtype),   # pad2: staged h1
            ],
        ),
        compiler_params=pltpu.CompilerParams(
            # Blocks are budgeted to <= ~1 MiB, so double-buffered in/out blocks
            # + two (C, K*C) weight tiles + the staging slabs fit comfortably in
            # v7x's 64 MiB physical / 32 MiB scoped VMEM (trivially on v5e/v6e).
            dimension_semantics=("parallel",),
            vmem_limit_bytes=32 * 1024 * 1024,
        ),
    )(x, W1f, t1, W2f, t2)


# ---------------- pure-JAX reference (for correctness check) ---------------- #
def tcn_block_ref(x, W1, b1, bn1, W2, b2, bn2, *, kernel_length=4,
                  dilation=1, eps=1e-3):
    K, d = kernel_length, dilation
    P = (K - 1) * d

    def elu(v):
        return jnp.where(v > 0, v, jnp.expm1(v))   # torch ELU uses expm1

    def cconv(h, W, b):
        hp = jnp.pad(h, ((0, 0), (0, 0), (P, 0)))
        y = lax.conv_general_dilated(hp, W, window_strides=(1,),
                                     padding='VALID', rhs_dilation=(d,),
                                     dimension_numbers=('NCH', 'OIH', 'NCH'))
        return y + b[None, :, None]

    def bn(h, gamma, beta, mean, var):
        return ((h - mean[None, :, None]) / jnp.sqrt(var[None, :, None] + eps)
                * gamma[None, :, None] + beta[None, :, None])

    h = elu(bn(cconv(x, W1, b1), *bn1))
    h = elu(bn(cconv(h, W2, b2), *bn2))
    return elu(x + h)


if __name__ == "__main__":
    # Shapes consistent with the module: n_filters=32 channels, short sequence.
    N, C, T = 8, 32, 16
    K = 4

    key = jax.random.PRNGKey(0)
    ks = jax.random.split(key, 16)

    x = jax.random.normal(ks[0], (N, C, T), dtype=jnp.float32)

    # Conv weights (PyTorch OIH layout), biases constant 0.0 as in __init__.
    W1 = 0.1 * jax.random.normal(ks[1], (C, C, K), dtype=jnp.float32)
    W2 = 0.1 * jax.random.normal(ks[2], (C, C, K), dtype=jnp.float32)
    b1 = jnp.zeros((C,), jnp.float32)
    b2 = jnp.zeros((C,), jnp.float32)

    # BatchNorm1d params / running stats (deterministic, non-trivial).
    bn1 = (1.0 + 0.1 * jax.random.normal(ks[3], (C,), jnp.float32),      # gamma
           0.1 * jax.random.normal(ks[4], (C,), jnp.float32),            # beta
           0.1 * jax.random.normal(ks[5], (C,), jnp.float32),            # mean
           0.5 + jnp.abs(jax.random.normal(ks[6], (C,), jnp.float32)))   # var
    bn2 = (1.0 + 0.1 * jax.random.normal(ks[7], (C,), jnp.float32),
           0.1 * jax.random.normal(ks[8], (C,), jnp.float32),
           0.1 * jax.random.normal(ks[9], (C,), jnp.float32),
           0.5 + jnp.abs(jax.random.normal(ks[10], (C,), jnp.float32)))

    def check(out, ref, name, atol, rtol):
        assert out.shape == ref.shape
        err = float(jnp.max(jnp.abs(out - ref)))
        assert bool(jnp.allclose(out, ref, atol=atol, rtol=rtol)), (
            f"{name}: max abs err {err}")

    # 1) f32 MXU operands, dilation=1 — bit-faithful path.
    ref1 = tcn_block_ref(x, W1, b1, bn1, W2, b2, bn2, kernel_length=K, dilation=1)
    out1 = jax.block_until_ready(
        tcn_block_pallas(x, W1, b1, bn1, W2, b2, bn2, kernel_length=K,
                         dilation=1, compute_dtype=jnp.float32))
    check(out1, ref1, "f32 d=1", atol=1e-4, rtol=1e-4)

    # 2) f32 MXU operands, dilation=2 — exercises dilated tap offsets.
    ref2 = tcn_block_ref(x, W1, b1, bn1, W2, b2, bn2, kernel_length=K, dilation=2)
    out2 = jax.block_until_ready(
        tcn_block_pallas(x, W1, b1, bn1, W2, b2, bn2, kernel_length=K,
                         dilation=2, compute_dtype=jnp.float32))
    check(out2, ref2, "f32 d=2", atol=1e-4, rtol=1e-4)

    # 3) default bf16 MXU operands (f32 accumulation / elementwise).
    out3 = jax.block_until_ready(
        tcn_block_pallas(x, W1, b1, bn1, W2, b2, bn2, kernel_length=K, dilation=1))
    check(out3, ref1, "bf16 d=1", atol=1e-1, rtol=0.0)

    # 4) multi-step grid + multiple fold groups per step.
    xb = jax.random.normal(ks[11], (32, C, T), dtype=jnp.float32)
    refb = tcn_block_ref(xb, W1, b1, bn1, W2, b2, bn2, kernel_length=K, dilation=1)
    outb = jax.block_until_ready(
        tcn_block_pallas(xb, W1, b1, bn1, W2, b2, bn2, kernel_length=K,
                         dilation=1, compute_dtype=jnp.float32, fold=4, groups=2))
    check(outb, refb, "f32 multi-step", atol=1e-4, rtol=1e-4)

    print("KERNEL_OK")
</pallas_src>

<mosaic_0001>
module attributes {stable_mosaic.version = 11 : i64} {
  func.func @tcn_block_kernel(%arg0: i32, %arg1: memref<8x32x16xf32, #tpu.memory_space<vmem>>, %arg2: memref<32x128xf32, #tpu.memory_space<vmem>>, %arg3: memref<32x1xf32, #tpu.memory_space<vmem>>, %arg4: memref<32x128xf32, #tpu.memory_space<vmem>>, %arg5: memref<32x1xf32, #tpu.memory_space<vmem>>, %arg6: memref<8x32x16xf32, #tpu.memory_space<vmem>>, %arg7: memref<32x152xf32, #tpu.memory_space<vmem>>, %arg8: memref<32x152xf32, #tpu.memory_space<vmem>>) attributes {dimension_semantics = [#tpu.dimension_semantics<parallel>], iteration_bounds = array<i64: 1>, scalar_prefetch = 0 : i64, scratch_operands = 2 : i64, tpu.core_type = #tpu.core_type<tc>, window_params = [{transform_indices = @transform_0, window_bounds = array<i64: 8, 32, 16>}, {pipeline_mode = #tpu.pipeline_mode<synchronous>, transform_indices = @transform_1, window_bounds = array<i64: 32, 128>}, {pipeline_mode = #tpu.pipeline_mode<synchronous>, transform_indices = @transform_2, window_bounds = array<i64: 32, 1>}, {pipeline_mode = #tpu.pipeline_mode<synchronous>, transform_indices = @transform_3, window_bounds = array<i64: 32, 128>}, {pipeline_mode = #tpu.pipeline_mode<synchronous>, transform_indices = @transform_4, window_bounds = array<i64: 32, 1>}, {transform_indices = @transform_5, window_bounds = array<i64: 8, 32, 16>}]} {
    %c0 = arith.constant 0 : index
    %c0_0 = arith.constant 0 : index
    %0 = vector.load %arg2[%c0, %c0_0] : memref<32x128xf32, #tpu.memory_space<vmem>>, vector<32x128xf32>
    %c0_1 = arith.constant 0 : index
    %c0_2 = arith.constant 0 : index
    %1 = vector.load %arg4[%c0_1, %c0_2] : memref<32x128xf32, #tpu.memory_space<vmem>>, vector<32x128xf32>
    %c0_3 = arith.constant 0 : index
    %c0_4 = arith.constant 0 : index
    %2 = vector.load %arg3[%c0_3, %c0_4] : memref<32x1xf32, #tpu.memory_space<vmem>>, vector<32x1xf32>
    %c0_5 = arith.constant 0 : index
    %c0_6 = arith.constant 0 : index
    %3 = vector.load %arg5[%c0_5, %c0_6] : memref<32x1xf32, #tpu.memory_space<vmem>>, vector<32x1xf32>
    %cst = arith.constant 0.000000e+00 : f32
    %4 = vector.broadcast %cst : f32 to vector<32x3xf32>
    %c0_7 = arith.constant 0 : index
    %c0_8 = arith.constant 0 : index
    %5 = vector.load %arg7[%c0_7, %c0_8] : memref<32x152xf32, #tpu.memory_space<vmem>>, vector<32x3xf32>
    tpu.vector_store %arg7[%c0_7, %c0_8], %4 {strides = array<i32>} : memref<32x152xf32, #tpu.memory_space<vmem>>, vector<32x3xf32>,
    %c0_9 = arith.constant 0 : index
    %c0_10 = arith.constant 0 : index
    %c0_11 = arith.constant 0 : index
    %6 = vector.load %arg1[%c0_9, %c0_10, %c0_11] : memref<8x32x16xf32, #tpu.memory_space<vmem>>, vector<1x32x16xf32>
    %7 = vector.shape_cast %6 : vector<1x32x16xf32> to vector<32x16xf32>
    %c0_12 = arith.constant 0 : index
    %c3 = arith.constant 3 : index
    %8 = vector.load %arg7[%c0_12, %c3] : memref<32x152xf32, #tpu.memory_space<vmem>>, vector<32x16xf32>
    tpu.vector_store %arg7[%c0_12, %c3], %7 {strides = array<i32>} : memref<32x152xf32, #tpu.memory_space<vmem>>, vector<32x16xf32>,
    %c0_13 = arith.constant 0 : index
    %c19 = arith.constant 19 : index
    %9 = vector.load %arg7[%c0_13, %c19] : memref<32x152xf32, #tpu.memory_space<vmem>>, vector<32x3xf32>
    tpu.vector_store %arg7[%c0_13, %c19], %4 {strides = array<i32>} : memref<32x152xf32, #tpu.memory_space<vmem>>, vector<32x3xf32>,
    %c1 = arith.constant 1 : index
    %c0_14 = arith.constant 0 : index
    %c0_15 = arith.constant 0 : index
    %10 = vector.load %arg1[%c1, %c0_14, %c0_15] : memref<8x32x16xf32, #tpu.memory_space<vmem>>, vector<1x32x16xf32>
    %11 = vector.shape_cast %10 : vector<1x32x16xf32> to vector<32x16xf32>
    %c0_16 = arith.constant 0 : index
    %c22 = arith.constant 22 : index
    %12 = vector.load %arg7[%c0_16, %c22] : memref<32x152xf32, #tpu.memory_space<vmem>>, vector<32x16xf32>
    tpu.vector_store %arg7[%c0_16, %c22], %11 {strides = array<i32>} : memref<32x152xf32, #tpu.memory_space<vmem>>, vector<32x16xf32>,
    %c0_17 = arith.constant 0 : index
    %c38 = arith.constant 38 : index
    %13 = vector.load %arg7[%c0_17, %c38] : memref<32x152xf32, #tpu.memory_space<vmem>>, vector<32x3xf32>
    tpu.vector_store %arg7[%c0_17, %c38], %4 {strides = array<i32>} : memref<32x152xf32, #tpu.memory_space<vmem>>, vector<32x3xf32>,
    %c2 = arith.constant 2 : index
    %c0_18 = arith.constant 0 : index
    %c0_19 = arith.constant 0 : index
    %14 = vector.load %arg1[%c2, %c0_18, %c0_19] : memref<8x32x16xf32, #tpu.memory_space<vmem>>, vector<1x32x16xf32>
    %15 = vector.shape_cast %14 : vector<1x32x16xf32> to vector<32x16xf32>
    %c0_20 = arith.constant 0 : index
    %c41 = arith.constant 41 : index
    %16 = vector.load %arg7[%c0_20, %c41] : memref<32x152xf32, #tpu.memory_space<vmem>>, vector<32x16xf32>
    tpu.vector_store %arg7[%c0_20, %c41], %15 {strides = array<i32>} : memref<32x152xf32, #tpu.memory_space<vmem>>, vector<32x16xf32>,
    %c0_21 = arith.constant 0 : index
    %c57 = arith.constant 57 : index
    %17 = vector.load %arg7[%c0_21, %c57] : memref<32x152xf32, #tpu.memory_space<vmem>>, vector<32x3xf32>
    tpu.vector_store %arg7[%c0_21, %c57], %4 {strides = array<i32>} : memref<32x152xf32, #tpu.memory_space<vmem>>, vector<32x3xf32>,
    %c3_22 = arith.constant 3 : index
    %c0_23 = arith.constant 0 : index
    %c0_24 = arith.constant 0 : index
    %18 = vector.load %arg1[%c3_22, %c0_23, %c0_24] : memref<8x32x16xf32, #tpu.memory_space<vmem>>, vector<1x32x16xf32>
    %19 = vector.shape_cast %18 : vector<1x32x16xf32> to vector<32x16xf32>
    %c0_25 = arith.constant 0 : index
    %c60 = arith.constant 60 : index
    %20 = vector.load %arg7[%c0_25, %c60] : memref<32x152xf32, #tpu.memory_space<vmem>>, vector<32x16xf32>
    tpu.vector_store %arg7[%c0_25, %c60], %19 {strides = array<i32>} : memref<32x152xf32, #tpu.memory_space<vmem>>, vector<32x16xf32>,
    %c0_26 = arith.constant 0 : index
    %c76 = arith.constant 76 : index
    %21 = vector.load %arg7[%c0_26, %c76] : memref<32x152xf32, #tpu.memory_space<vmem>>, vector<32x3xf32>
    tpu.vector_store %arg7[%c0_26, %c76], %4 {strides = array<i32>} : memref<32x152xf32, #tpu.memory_space<vmem>>, vector<32x3xf32>,
    %c4 = arith.constant 4 : index
    %c0_27 = arith.constant 0 : index
    %c0_28 = arith.constant 0 : index
    %22 = vector.load %arg1[%c4, %c0_27, %c0_28] : memref<8x32x16xf32, #tpu.memory_space<vmem>>, vector<1x32x16xf32>
    %23 = vector.shape_cast %22 : vector<1x32x16xf32> to vector<32x16xf32>
    %c0_29 = arith.constant 0 : index
    %c79 = arith.constant 79 : index
    %24 = vector.load %arg7[%c0_29, %c79] : memref<32x152xf32, #tpu.memory_space<vmem>>, vector<32x16xf32>
    tpu.vector_store %arg7[%c0_29, %c79], %23 {strides = array<i32>} : memref<32x152xf32, #tpu.memory_space<vmem>>, vector<32x16xf32>,
    %c0_30 = arith.constant 0 : index
    %c95 = arith.constant 95 : index
    %25 = vector.load %arg7[%c0_30, %c95] : memref<32x152xf32, #tpu.memory_space<vmem>>, vector<32x3xf32>
    tpu.vector_store %arg7[%c0_30, %c95], %4 {strides = array<i32>} : memref<32x152xf32, #tpu.memory_space<vmem>>, vector<32x3xf32>,
    %c5 = arith.constant 5 : index
    %c0_31 = arith.constant 0 : index
    %c0_32 = arith.constant 0 : index
    %26 = vector.load %arg1[%c5, %c0_31, %c0_32] : memref<8x32x16xf32, #tpu.memory_space<vmem>>, vector<1x32x16xf32>
    %27 = vector.shape_cast %26 : vector<1x32x16xf32> to vector<32x16xf32>
    %c0_33 = arith.constant 0 : index
    %c98 = arith.constant 98 : index
    %28 = vector.load %arg7[%c0_33, %c98] : memref<32x152xf32, #tpu.memory_space<vmem>>, vector<32x16xf32>
    tpu.vector_store %arg7[%c0_33, %c98], %27 {strides = array<i32>} : memref<32x152xf32, #tpu.memory_space<vmem>>, vector<32x16xf32>,
    %c0_34 = arith.constant 0 : index
    %c114 = arith.constant 114 : index
    %29 = vector.load %arg7[%c0_34, %c114] : memref<32x152xf32, #tpu.memory_space<vmem>>, vector<32x3xf32>
    tpu.vector_store %arg7[%c0_34, %c114], %4 {strides = array<i32>} : memref<32x152xf32, #tpu.memory_space<vmem>>, vector<32x3xf32>,
    %c6 = arith.constant 6 : index
    %c0_35 = arith.constant 0 : index
    %c0_36 = arith.constant 0 : index
    %30 = vector.load %arg1[%c6, %c0_35, %c0_36] : memref<8x32x16xf32, #tpu.memory_space<vmem>>, vector<1x32x16xf32>
    %31 = vector.shape_cast %30 : vector<1x32x16xf32> to vector<32x16xf32>
    %c0_37 = arith.constant 0 : index
    %c117 = arith.constant 117 : index
    %32 = vector.load %arg7[%c0_37, %c117] : memref<32x152xf32, #tpu.memory_space<vmem>>, vector<32x16xf32>
    tpu.vector_store %arg7[%c0_37, %c117], %31 {strides = array<i32>} : memref<32x152xf32, #tpu.memory_space<vmem>>, vector<32x16xf32>,
    %c0_38 = arith.constant 0 : index
    %c133 = arith.constant 133 : index
    %33 = vector.load %arg7[%c0_38, %c133] : memref<32x152xf32, #tpu.memory_space<vmem>>, vector<32x3xf32>
    tpu.vector_store %arg7[%c0_38, %c133], %4 {strides = array<i32>} : memref<32x152xf32, #tpu.memory_space<vmem>>, vector<32x3xf32>,
    %c7 = arith.constant 7 : index
    %c0_39 = arith.constant 0 : index
    %c0_40 = arith.constant 0 : index
    %34 = vector.load %arg1[%c7, %c0_39, %c0_40] : memref<8x32x16xf32, #tpu.memory_space<vmem>>, vector<1x32x16xf32>
    %35 = vector.shape_cast %34 : vector<1x32x16xf32> to vector<32x16xf32>
    %c0_41 = arith.constant 0 : index
    %c136 = arith.constant 136 : index
    %36 = vector.load %arg7[%c0_41, %c136] : memref<32x152xf32, #tpu.memory_space<vmem>>, vector<32x16xf32>
    tpu.vector_store %arg7[%c0_41, %c136], %35 {strides = array<i32>} : memref<32x152xf32, #tpu.memory_space<vmem>>, vector<32x16xf32>,
    %c0_42 = arith.constant 0 : index
    %c0_43 = arith.constant 0 : index
    %37 = vector.load %arg7[%c0_42, %c0_43] : memref<32x152xf32, #tpu.memory_space<vmem>>, vector<32x149xf32>
    %c0_44 = arith.constant 0 : index
    %c1_45 = arith.constant 1 : index
    %38 = vector.load %arg7[%c0_44, %c1_45] : memref<32x152xf32, #tpu.memory_space<vmem>>, vector<32x149xf32>
    %c0_46 = arith.constant 0 : index
    %c2_47 = arith.constant 2 : index
    %39 = vector.load %arg7[%c0_46, %c2_47] : memref<32x152xf32, #tpu.memory_space<vmem>>, vector<32x149xf32>
    %c0_48 = arith.constant 0 : index
    %c3_49 = arith.constant 3 : index
    %40 = vector.load %arg7[%c0_48, %c3_49] : memref<32x152xf32, #tpu.memory_space<vmem>>, vector<32x149xf32>
    %41 = tpu.concatenate %37, %38, %39, %40 in 0 : vector<32x149xf32>, vector<32x149xf32>, vector<32x149xf32>, vector<32x149xf32> -> vector<128x149xf32>
    %cst_50 = arith.constant dense<0.000000e+00> : vector<32x149xf32>
    %42 = tpu.matmul %0, %41, %cst_50 {dimension_numbers = #tpu.dot_dimension_numbers<[1], [0], [0], [1], [0, 0, 1, 1], [], []>} : vector<32x128xf32>, vector<128x149xf32>, vector<32x149xf32> -> vector<32x149xf32>
    %43 = vector.broadcast %2 : vector<32x1xf32> to vector<32x149xf32>
    %44 = arith.addf %42, %43 : vector<32x149xf32>
    %cst_51 = arith.constant 0.000000e+00 : f32
    %45 = vector.broadcast %cst_51 : f32 to vector<32x149xf32>
    %46 = arith.cmpf ogt, %44, %45 : vector<32x149xf32>
    %47 = math.exp %44 : vector<32x149xf32>
    %cst_52 = arith.constant 1.000000e+00 : f32
    %48 = vector.broadcast %cst_52 : f32 to vector<32x149xf32>
    %49 = arith.subf %47, %48 : vector<32x149xf32>
    %50 = arith.select %46, %44, %49 : vector<32x149xi1>, vector<32x149xf32>
    %c0_53 = arith.constant 0 : index
    %c3_54 = arith.constant 3 : index
    %51 = vector.load %arg8[%c0_53, %c3_54] : memref<32x152xf32, #tpu.memory_space<vmem>>, vector<32x149xf32>
    tpu.vector_store %arg8[%c0_53, %c3_54], %50 {strides = array<i32>} : memref<32x152xf32, #tpu.memory_space<vmem>>, vector<32x149xf32>,
    %c0_55 = arith.constant 0 : index
    %c0_56 = arith.constant 0 : index
    %52 = vector.load %arg8[%c0_55, %c0_56] : memref<32x152xf32, #tpu.memory_space<vmem>>, vector<32x3xf32>
    tpu.vector_store %arg8[%c0_55, %c0_56], %4 {strides = array<i32>} : memref<32x152xf32, #tpu.memory_space<vmem>>, vector<32x3xf32>,
    %c0_57 = arith.constant 0 : index
    %c19_58 = arith.constant 19 : index
    %53 = vector.load %arg8[%c0_57, %c19_58] : memref<32x152xf32, #tpu.memory_space<vmem>>, vector<32x3xf32>
    tpu.vector_store %arg8[%c0_57, %c19_58], %4 {strides = array<i32>} : memref<32x152xf32, #tpu.memory_space<vmem>>, vector<32x3xf32>,
    %c0_59 = arith.constant 0 : index
    %c38_60 = arith.constant 38 : index
    %54 = vector.load %arg8[%c0_59, %c38_60] : memref<32x152xf32, #tpu.memory_space<vmem>>, vector<32x3xf32>
    tpu.vector_store %arg8[%c0_59, %c38_60], %4 {strides = array<i32>} : memref<32x152xf32, #tpu.memory_space<vmem>>, vector<32x3xf32>,
    %c0_61 = arith.constant 0 : index
    %c57_62 = arith.constant 57 : index
    %55 = vector.load %arg8[%c0_61, %c57_62] : memref<32x152xf32, #tpu.memory_space<vmem>>, vector<32x3xf32>
    tpu.vector_store %arg8[%c0_61, %c57_62], %4 {strides = array<i32>} : memref<32x152xf32, #tpu.memory_space<vmem>>, vector<32x3xf32>,
    %c0_63 = arith.constant 0 : index
    %c76_64 = arith.constant 76 : index
    %56 = vector.load %arg8[%c0_63, %c76_64] : memref<32x152xf32, #tpu.memory_space<vmem>>, vector<32x3xf32>
    tpu.vector_store %arg8[%c0_63, %c76_64], %4 {strides = array<i32>} : memref<32x152xf32, #tpu.memory_space<vmem>>, vector<32x3xf32>,
    %c0_65 = arith.constant 0 : index
    %c95_66 = arith.constant 95 : index
    %57 = vector.load %arg8[%c0_65, %c95_66] : memref<32x152xf32, #tpu.memory_space<vmem>>, vector<32x3xf32>
    tpu.vector_store %arg8[%c0_65, %c95_66], %4 {strides = array<i32>} : memref<32x152xf32, #tpu.memory_space<vmem>>, vector<32x3xf32>,
    %c0_67 = arith.constant 0 : index
    %c114_68 = arith.constant 114 : index
    %58 = vector.load %arg8[%c0_67, %c114_68] : memref<32x152xf32, #tpu.memory_space<vmem>>, vector<32x3xf32>
    tpu.vector_store %arg8[%c0_67, %c114_68], %4 {strides = array<i32>} : memref<32x152xf32, #tpu.memory_space<vmem>>, vector<32x3xf32>,
    %c0_69 = arith.constant 0 : index
    %c133_70 = arith.constant 133 : index
    %59 = vector.load %arg8[%c0_69, %c133_70] : memref<32x152xf32, #tpu.memory_space<vmem>>, vector<32x3xf32>
    tpu.vector_store %arg8[%c0_69, %c133_70], %4 {strides = array<i32>} : memref<32x152xf32, #tpu.memory_space<vmem>>, vector<32x3xf32>,
    %c0_71 = arith.constant 0 : index
    %c0_72 = arith.constant 0 : index
    %60 = vector.load %arg8[%c0_71, %c0_72] : memref<32x152xf32, #tpu.memory_space<vmem>>, vector<32x149xf32>
    %c0_73 = arith.constant 0 : index
    %c1_74 = arith.constant 1 : index
    %61 = vector.load %arg8[%c0_73, %c1_74] : memref<32x152xf32, #tpu.memory_space<vmem>>, vector<32x149xf32>
    %c0_75 = arith.constant 0 : index
    %c2_76 = arith.constant 2 : index
    %62 = vector.load %arg8[%c0_75, %c2_76] : memref<32x152xf32, #tpu.memory_space<vmem>>, vector<32x149xf32>
    %c0_77 = arith.constant 0 : index
    %c3_78 = arith.constant 3 : index
    %63 = vector.load %arg8[%c0_77, %c3_78] : memref<32x152xf32, #tpu.memory_space<vmem>>, vector<32x149xf32>
    %64 = tpu.concatenate %60, %61, %62, %63 in 0 : vector<32x149xf32>, vector<32x149xf32>, vector<32x149xf32>, vector<32x149xf32> -> vector<128x149xf32>
    %cst_79 = arith.constant dense<0.000000e+00> : vector<32x149xf32>
    %65 = tpu.matmul %1, %64, %cst_79 {dimension_numbers = #tpu.dot_dimension_numbers<[1], [0], [0], [1], [0, 0, 1, 1], [], []>} : vector<32x128xf32>, vector<128x149xf32>, vector<32x149xf32> -> vector<32x149xf32>
    %66 = vector.broadcast %3 : vector<32x1xf32> to vector<32x149xf32>
    %67 = arith.addf %65, %66 : vector<32x149xf32>
    %cst_80 = arith.constant 0.000000e+00 : f32
    %68 = vector.broadcast %cst_80 : f32 to vector<32x149xf32>
    %69 = arith.cmpf ogt, %67, %68 : vector<32x149xf32>
    %70 = math.exp %67 : vector<32x149xf32>
    %cst_81 = arith.constant 1.000000e+00 : f32
    %71 = vector.broadcast %cst_81 : f32 to vector<32x149xf32>
    %72 = arith.subf %70, %71 : vector<32x149xf32>
    %73 = arith.select %69, %67, %72 : vector<32x149xi1>, vector<32x149xf32>
    %c0_82 = arith.constant 0 : index
    %c0_83 = arith.constant 0 : index
    %c0_84 = arith.constant 0 : index
    %74 = vector.load %arg1[%c0_82, %c0_83, %c0_84] : memref<8x32x16xf32, #tpu.memory_space<vmem>>, vector<1x32x16xf32>
    %75 = vector.shape_cast %74 : vector<1x32x16xf32> to vector<32x16xf32>
    %76 = vector.extract_strided_slice %73 {offsets = [0, 0], sizes = [32, 16], strides = [1, 1]} : vector<32x149xf32> to vector<32x16xf32>
    %77 = arith.addf %75, %76 : vector<32x16xf32>
    %cst_85 = arith.constant 0.000000e+00 : f32
    %78 = vector.broadcast %cst_85 : f32 to vector<32x16xf32>
    %79 = arith.cmpf ogt, %77, %78 : vector<32x16xf32>
    %80 = math.exp %77 : vector<32x16xf32>
    %cst_86 = arith.constant 1.000000e+00 : f32
    %81 = vector.broadcast %cst_86 : f32 to vector<32x16xf32>
    %82 = arith.subf %80, %81 : vector<32x16xf32>
    %83 = arith.select %79, %77, %82 : vector<32x16xi1>, vector<32x16xf32>
    %c0_87 = arith.constant 0 : index
    %c0_88 = arith.constant 0 : index
    %c0_89 = arith.constant 0 : index
    %84 = vector.load %arg6[%c0_87, %c0_88, %c0_89] : memref<8x32x16xf32, #tpu.memory_space<vmem>>, vector<1x32x16xf32>
    %85 = vector.shape_cast %84 : vector<1x32x16xf32> to vector<32x16xf32>
    %86 = vector.shape_cast %83 : vector<32x16xf32> to vector<1x32x16xf32>
    tpu.vector_store %arg6[%c0_87, %c0_88, %c0_89], %86 {strides = array<i32>} : memref<8x32x16xf32, #tpu.memory_space<vmem>>, vector<1x32x16xf32>,
    %c1_90 = arith.constant 1 : index
    %c0_91 = arith.constant 0 : index
    %c0_92 = arith.constant 0 : index
    %87 = vector.load %arg1[%c1_90, %c0_91, %c0_92] : memref<8x32x16xf32, #tpu.memory_space<vmem>>, vector<1x32x16xf32>
    %88 = vector.shape_cast %87 : vector<1x32x16xf32> to vector<32x16xf32>
    %89 = vector.extract_strided_slice %73 {offsets = [0, 19], sizes = [32, 16], strides = [1, 1]} : vector<32x149xf32> to vector<32x16xf32>
    %90 = arith.addf %88, %89 : vector<32x16xf32>
    %cst_93 = arith.constant 0.000000e+00 : f32
    %91 = vector.broadcast %cst_93 : f32 to vector<32x16xf32>
    %92 = arith.cmpf ogt, %90, %91 : vector<32x16xf32>
    %93 = math.exp %90 : vector<32x16xf32>
    %cst_94 = arith.constant 1.000000e+00 : f32
    %94 = vector.broadcast %cst_94 : f32 to vector<32x16xf32>
    %95 = arith.subf %93, %94 : vector<32x16xf32>
    %96 = arith.select %92, %90, %95 : vector<32x16xi1>, vector<32x16xf32>
    %c1_95 = arith.constant 1 : index
    %c0_96 = arith.constant 0 : index
    %c0_97 = arith.constant 0 : index
    %97 = vector.load %arg6[%c1_95, %c0_96, %c0_97] : memref<8x32x16xf32, #tpu.memory_space<vmem>>, vector<1x32x16xf32>
    %98 = vector.shape_cast %97 : vector<1x32x16xf32> to vector<32x16xf32>
    %99 = vector.shape_cast %96 : vector<32x16xf32> to vector<1x32x16xf32>
    tpu.vector_store %arg6[%c1_95, %c0_96, %c0_97], %99 {strides = array<i32>} : memref<8x32x16xf32, #tpu.memory_space<vmem>>, vector<1x32x16xf32>,
    %c2_98 = arith.constant 2 : index
    %c0_99 = arith.constant 0 : index
    %c0_100 = arith.constant 0 : index
    %100 = vector.load %arg1[%c2_98, %c0_99, %c0_100] : memref<8x32x16xf32, #tpu.memory_space<vmem>>, vector<1x32x16xf32>
    %101 = vector.shape_cast %100 : vector<1x32x16xf32> to vector<32x16xf32>
    %102 = vector.extract_strided_slice %73 {offsets = [0, 38], sizes = [32, 16], strides = [1, 1]} : vector<32x149xf32> to vector<32x16xf32>
    %103 = arith.addf %101, %102 : vector<32x16xf32>
    %cst_101 = arith.constant 0.000000e+00 : f32
    %104 = vector.broadcast %cst_101 : f32 to vector<32x16xf32>
    %105 = arith.cmpf ogt, %103, %104 : vector<32x16xf32>
    %106 = math.exp %103 : vector<32x16xf32>
    %cst_102 = arith.constant 1.000000e+00 : f32
    %107 = vector.broadcast %cst_102 : f32 to vector<32x16xf32>
    %108 = arith.subf %106, %107 : vector<32x16xf32>
    %109 = arith.select %105, %103, %108 : vector<32x16xi1>, vector<32x16xf32>
    %c2_103 = arith.constant 2 : index
    %c0_104 = arith.constant 0 : index
    %c0_105 = arith.constant 0 : index
    %110 = vector.load %arg6[%c2_103, %c0_104, %c0_105] : memref<8x32x16xf32, #tpu.memory_space<vmem>>, vector<1x32x16xf32>
    %111 = vector.shape_cast %110 : vector<1x32x16xf32> to vector<32x16xf32>
    %112 = vector.shape_cast %109 : vector<32x16xf32> to vector<1x32x16xf32>
    tpu.vector_store %arg6[%c2_103, %c0_104, %c0_105], %112 {strides = array<i32>} : memref<8x32x16xf32, #tpu.memory_space<vmem>>, vector<1x32x16xf32>,
    %c3_106 = arith.constant 3 : index
    %c0_107 = arith.constant 0 : index
    %c0_108 = arith.constant 0 : index
    %113 = vector.load %arg1[%c3_106, %c0_107, %c0_108] : memref<8x32x16xf32, #tpu.memory_space<vmem>>, vector<1x32x16xf32>
    %114 = vector.shape_cast %113 : vector<1x32x16xf32> to vector<32x16xf32>
    %115 = vector.extract_strided_slice %73 {offsets = [0, 57], sizes = [32, 16], strides = [1, 1]} : vector<32x149xf32> to vector<32x16xf32>
    %116 = arith.addf %114, %115 : vector<32x16xf32>
    %cst_109 = arith.constant 0.000000e+00 : f32
    %117 = vector.broadcast %cst_109 : f32 to vector<32x16xf32>
    %118 = arith.cmpf ogt, %116, %117 : vector<32x16xf32>
    %119 = math.exp %116 : vector<32x16xf32>
    %cst_110 = arith.constant 1.000000e+00 : f32
    %120 = vector.broadcast %cst_110 : f32 to vector<32x16xf32>
    %121 = arith.subf %119, %120 : vector<32x16xf32>
    %122 = arith.select %118, %116, %121 : vector<32x16xi1>, vector<32x16xf32>
    %c3_111 = arith.constant 3 : index
    %c0_112 = arith.constant 0 : index
    %c0_113 = arith.constant 0 : index
    %123 = vector.load %arg6[%c3_111, %c0_112, %c0_113] : memref<8x32x16xf32, #tpu.memory_space<vmem>>, vector<1x32x16xf32>
    %124 = vector.shape_cast %123 : vector<1x32x16xf32> to vector<32x16xf32>
    %125 = vector.shape_cast %122 : vector<32x16xf32> to vector<1x32x16xf32>
    tpu.vector_store %arg6[%c3_111, %c0_112, %c0_113], %125 {strides = array<i32>} : memref<8x32x16xf32, #tpu.memory_space<vmem>>, vector<1x32x16xf32>,
    %c4_114 = arith.constant 4 : index
    %c0_115 = arith.constant 0 : index
    %c0_116 = arith.constant 0 : index
    %126 = vector.load %arg1[%c4_114, %c0_115, %c0_116] : memref<8x32x16xf32, #tpu.memory_space<vmem>>, vector<1x32x16xf32>
    %127 = vector.shape_cast %126 : vector<1x32x16xf32> to vector<32x16xf32>
    %128 = vector.extract_strided_slice %73 {offsets = [0, 76], sizes = [32, 16], strides = [1, 1]} : vector<32x149xf32> to vector<32x16xf32>
    %129 = arith.addf %127, %128 : vector<32x16xf32>
    %cst_117 = arith.constant 0.000000e+00 : f32
    %130 = vector.broadcast %cst_117 : f32 to vector<32x16xf32>
    %131 = arith.cmpf ogt, %129, %130 : vector<32x16xf32>
    %132 = math.exp %129 : vector<32x16xf32>
    %cst_118 = arith.constant 1.000000e+00 : f32
    %133 = vector.broadcast %cst_118 : f32 to vector<32x16xf32>
    %134 = arith.subf %132, %133 : vector<32x16xf32>
    %135 = arith.select %131, %129, %134 : vector<32x16xi1>, vector<32x16xf32>
    %c4_119 = arith.constant 4 : index
    %c0_120 = arith.constant 0 : index
    %c0_121 = arith.constant 0 : index
    %136 = vector.load %arg6[%c4_119, %c0_120, %c0_121] : memref<8x32x16xf32, #tpu.memory_space<vmem>>, vector<1x32x16xf32>
    %137 = vector.shape_cast %136 : vector<1x32x16xf32> to vector<32x16xf32>
    %138 = vector.shape_cast %135 : vector<32x16xf32> to vector<1x32x16xf32>
    tpu.vector_store %arg6[%c4_119, %c0_120, %c0_121], %138 {strides = array<i32>} : memref<8x32x16xf32, #tpu.memory_space<vmem>>, vector<1x32x16xf32>,
    %c5_122 = arith.constant 5 : index
    %c0_123 = arith.constant 0 : index
    %c0_124 = arith.constant 0 : index
    %139 = vector.load %arg1[%c5_122, %c0_123, %c0_124] : memref<8x32x16xf32, #tpu.memory_space<vmem>>, vector<1x32x16xf32>
    %140 = vector.shape_cast %139 : vector<1x32x16xf32> to vector<32x16xf32>
    %141 = vector.extract_strided_slice %73 {offsets = [0, 95], sizes = [32, 16], strides = [1, 1]} : vector<32x149xf32> to vector<32x16xf32>
    %142 = arith.addf %140, %141 : vector<32x16xf32>
    %cst_125 = arith.constant 0.000000e+00 : f32
    %143 = vector.broadcast %cst_125 : f32 to vector<32x16xf32>
    %144 = arith.cmpf ogt, %142, %143 : vector<32x16xf32>
    %145 = math.exp %142 : vector<32x16xf32>
    %cst_126 = arith.constant 1.000000e+00 : f32
    %146 = vector.broadcast %cst_126 : f32 to vector<32x16xf32>
    %147 = arith.subf %145, %146 : vector<32x16xf32>
    %148 = arith.select %144, %142, %147 : vector<32x16xi1>, vector<32x16xf32>
    %c5_127 = arith.constant 5 : index
    %c0_128 = arith.constant 0 : index
    %c0_129 = arith.constant 0 : index
    %149 = vector.load %arg6[%c5_127, %c0_128, %c0_129] : memref<8x32x16xf32, #tpu.memory_space<vmem>>, vector<1x32x16xf32>
    %150 = vector.shape_cast %149 : vector<1x32x16xf32> to vector<32x16xf32>
    %151 = vector.shape_cast %148 : vector<32x16xf32> to vector<1x32x16xf32>
    tpu.vector_store %arg6[%c5_127, %c0_128, %c0_129], %151 {strides = array<i32>} : memref<8x32x16xf32, #tpu.memory_space<vmem>>, vector<1x32x16xf32>,
    %c6_130 = arith.constant 6 : index
    %c0_131 = arith.constant 0 : index
    %c0_132 = arith.constant 0 : index
    %152 = vector.load %arg1[%c6_130, %c0_131, %c0_132] : memref<8x32x16xf32, #tpu.memory_space<vmem>>, vector<1x32x16xf32>
    %153 = vector.shape_cast %152 : vector<1x32x16xf32> to vector<32x16xf32>
    %154 = vector.extract_strided_slice %73 {offsets = [0, 114], sizes = [32, 16], strides = [1, 1]} : vector<32x149xf32> to vector<32x16xf32>
    %155 = arith.addf %153, %154 : vector<32x16xf32>
    %cst_133 = arith.constant 0.000000e+00 : f32
    %156 = vector.broadcast %cst_133 : f32 to vector<32x16xf32>
    %157 = arith.cmpf ogt, %155, %156 : vector<32x16xf32>
    %158 = math.exp %155 : vector<32x16xf32>
    %cst_134 = arith.constant 1.000000e+00 : f32
    %159 = vector.broadcast %cst_134 : f32 to vector<32x16xf32>
    %160 = arith.subf %158, %159 : vector<32x16xf32>
    %161 = arith.select %157, %155, %160 : vector<32x16xi1>, vector<32x16xf32>
    %c6_135 = arith.constant 6 : index
    %c0_136 = arith.constant 0 : index
    %c0_137 = arith.constant 0 : index
    %162 = vector.load %arg6[%c6_135, %c0_136, %c0_137] : memref<8x32x16xf32, #tpu.memory_space<vmem>>, vector<1x32x16xf32>
    %163 = vector.shape_cast %162 : vector<1x32x16xf32> to vector<32x16xf32>
    %164 = vector.shape_cast %161 : vector<32x16xf32> to vector<1x32x16xf32>
    tpu.vector_store %arg6[%c6_135, %c0_136, %c0_137], %164 {strides = array<i32>} : memref<8x32x16xf32, #tpu.memory_space<vmem>>, vector<1x32x16xf32>,
    %c7_138 = arith.constant 7 : index
    %c0_139 = arith.constant 0 : index
    %c0_140 = arith.constant 0 : index
    %165 = vector.load %arg1[%c7_138, %c0_139, %c0_140] : memref<8x32x16xf32, #tpu.memory_space<vmem>>, vector<1x32x16xf32>
    %166 = vector.shape_cast %165 : vector<1x32x16xf32> to vector<32x16xf32>
    %167 = vector.extract_strided_slice %73 {offsets = [0, 133], sizes = [32, 16], strides = [1, 1]} : vector<32x149xf32> to vector<32x16xf32>
    %168 = arith.addf %166, %167 : vector<32x16xf32>
    %cst_141 = arith.constant 0.000000e+00 : f32
    %169 = vector.broadcast %cst_141 : f32 to vector<32x16xf32>
    %170 = arith.cmpf ogt, %168, %169 : vector<32x16xf32>
    %171 = math.exp %168 : vector<32x16xf32>
    %cst_142 = arith.constant 1.000000e+00 : f32
    %172 = vector.broadcast %cst_142 : f32 to vector<32x16xf32>
    %173 = arith.subf %171, %172 : vector<32x16xf32>
    %174 = arith.select %170, %168, %173 : vector<32x16xi1>, vector<32x16xf32>
    %c7_143 = arith.constant 7 : index
    %c0_144 = arith.constant 0 : index
    %c0_145 = arith.constant 0 : index
    %175 = vector.load %arg6[%c7_143, %c0_144, %c0_145] : memref<8x32x16xf32, #tpu.memory_space<vmem>>, vector<1x32x16xf32>
    %176 = vector.shape_cast %175 : vector<1x32x16xf32> to vector<32x16xf32>
    %177 = vector.shape_cast %174 : vector<32x16xf32> to vector<1x32x16xf32>
    tpu.vector_store %arg6[%c7_143, %c0_144, %c0_145], %177 {strides = array<i32>} : memref<8x32x16xf32, #tpu.memory_space<vmem>>, vector<1x32x16xf32>,
    return
  }
  func.func @transform_0(%arg0: i32) -> (i32, i32, i32) {
    %c0_i32 = arith.constant 0 : i32
    %c0_i32_0 = arith.constant 0 : i32
    %c0_i32_1 = arith.constant 0 : i32
    return %arg0, %c0_i32, %c0_i32_0 : i32, i32, i32
  }
  func.func @transform_1(%arg0: i32) -> (i32, i32) {
    %c0_i32 = arith.constant 0 : i32
    %c0_i32_0 = arith.constant 0 : i32
    %c0_i32_1 = arith.constant 0 : i32
    return %c0_i32, %c0_i32_0 : i32, i32
  }
  func.func @transform_2(%arg0: i32) -> (i32, i32) {
    %c0_i32 = arith.constant 0 : i32
    %c0_i32_0 = arith.constant 0 : i32
    %c0_i32_1 = arith.constant 0 : i32
    return %c0_i32, %c0_i32_0 : i32, i32
  }
  func.func @transform_3(%arg0: i32) -> (i32, i32) {
    %c0_i32 = arith.constant 0 : i32
    %c0_i32_0 = arith.constant 0 : i32
    %c0_i32_1 = arith.constant 0 : i32
    return %c0_i32, %c0_i32_0 : i32, i32
  }
  func.func @transform_4(%arg0: i32) -> (i32, i32) {
    %c0_i32 = arith.constant 0 : i32
    %c0_i32_0 = arith.constant 0 : i32
    %c0_i32_1 = arith.constant 0 : i32
    return %c0_i32, %c0_i32_0 : i32, i32
  }
  func.func @transform_5(%arg0: i32) -> (i32, i32, i32) {
    %c0_i32 = arith.constant 0 : i32
    %c0_i32_0 = arith.constant 0 : i32
    %c0_i32_1 = arith.constant 0 : i32
    return %arg0, %c0_i32, %c0_i32_0 : i32, i32, i32
  }
}

</mosaic_0001>

<bundles_post_ra>
// kernel: tpu_custom_call.1
= control target key start
LH: loop header
LB: loop body
LE: loop exit
PB: predicated region body
PF: predicated region fallthrough
CT: control target
= control target key end

     0   :  { %vm36_vm0 = vcmask 23552   ;;  %v1674_v2 = vmov 0.0   ;;  %s1675_s22 = smov 22   ;;  %s1676_s23 = smov 3   ;;  %vm61_vm1 = vcmask 154648   ;;  %vm66_vm2 = vcmask 179352   ;;  %s2525_s0 = inlined_call_operand.vmem [shape: f32[8,32,16], index: 0, kind: input, shape index: {}]   ;;  %s2526_s2 = inlined_call_operand.vmem [shape: f32[32,1], index: 2, kind: input, shape index: {}]   ;;  %s2527_s1 = inlined_call_operand.vmem [shape: f32[32,128], index: 1, kind: input, shape index: {}]   ;;  %s2528_s4 = inlined_call_operand.vmem [shape: f32[32,1], index: 4, kind: input, shape index: {}]   ;;  %s2529_s3 = inlined_call_operand.vmem [shape: f32[32,128], index: 3, kind: input, shape index: {}]   ;;  %s2530_s5 = inlined_call_operand.vmem [shape: f32[8,32,16], index: 5, kind: output, shape index: {}]  }
   0x1   :  { %v1240_v0 = vld [vmem:[%s2525_s0 + $0x20] sm:$0xff]  ;;  %37 = vst.msk [vmem:[#allocation2] sm:$0xff] %vm36_vm0, %v1674_v2  ;;  %38 = vst.msk [vmem:[#allocation2 + $0x10] sm:$0xff] %vm36_vm0, %v1674_v2  ;;  %475 = vmatprep.mubr.f32.mxu0 %v1674_v2  ;;  %802 = vmatprep.mubr.f32.mxu1 %v1674_v2  ;;  %v1241_v3 = vld [vmem:[%s2525_s0 + $0x28] sm:$0xff]  ;;  %s1677_s11 = smov 41   ;;  %s1678_s20 = smov 60  }
   0x2   :  { %v41_v1 = vld [vmem:[%s2525_s0] sm:$0xff]  ;;  %39 = vst.msk [vmem:[#allocation2 + $0x20] sm:$0xff] %vm36_vm0, %v1674_v2  ;;  %40 = vst.msk [vmem:[#allocation2 + $0x30] sm:$0xff] %vm36_vm0, %v1674_v2  ;;  %80 = vrot.lane.b32.xlu1 %v1240_v0, %s1675_s22  ;;  %v42_v4 = vld [vmem:[%s2525_s0 + $0x8] sm:$0xff]  ;;  %s1679_s30 = smov 79   ;;  %s1680_s14 = smov 98  }
   0x3   :  { %49 = vrot.lane.b32.xlu0 %v41_v1, %s1676_s23  ;;  %v44_v5 = vld [vmem:[%s2525_s0 + $0x18] sm:$0xff]  ;;  %v43_v6 = vld [vmem:[%s2525_s0 + $0x10] sm:$0xff]  ;;  %v1245_v7 = vld [vmem:[%s2525_s0 + $0x48] sm:$0xff]  ;;  %s1681_s19 = smov 117   ;;  %s1682_s29 = smov 8   ;;  %vm92_vm3 = vcmask 310448  }
   0x4   :  { %v1244_v8 = vld [vmem:[%s2525_s0 + $0x40] sm:$0xff]  ;;  %v1243_v9 = vld [vmem:[%s2525_s0 + $0x38] sm:$0xff]  ;;  %v1242_v10 = vld [vmem:[%s2525_s0 + $0x30] sm:$0xff]  ;;  %vm97_vm4 = vcmask 335152   ;;  %vm123_vm5 = vcmask 466248   ;;  %vm128_vm6 = vcmask 490952  }
   0x5   :  { %v1249_v11 = vld [vmem:[%s2525_s0 + $0x68] sm:$0xff]  ;;  %v1248_v12 = vld [vmem:[%s2525_s0 + $0x60] sm:$0xff]  ;;  %v1247_v13 = vld [vmem:[%s2525_s0 + $0x58] sm:$0xff]  ;;  %vm154_vm7 = vcmask 622048   ;;  %vm159_vm8 = vcmask 646752   ;;  %vm185_vm9 = vcmask 777848  }
   0x6   :  { %82 = vrot.lane.b32.xlu1 %v1241_v3, %s1675_s22  ;;  %v1246_v14 = vld [vmem:[%s2525_s0 + $0x50] sm:$0xff]  ;;  %v1253_v15 = vld [vmem:[%s2525_s0 + $0x88] sm:$0xff]  ;;  %v1252_v16 = vld [vmem:[%s2525_s0 + $0x80] sm:$0xff]  ;;  %vm190_vm10 = vcmask 802552   ;;  %vm216_vm11 = vcmask 933648   ;;  %vm221_vm12 = vcmask 958352  }
   0x7   :  { %51 = vrot.lane.b32.xlu0 %v42_v4, %s1676_s23  ;;  %v1251_v17 = vld [vmem:[%s2525_s0 + $0x78] sm:$0xff]  ;;  %v1250_v18 = vld [vmem:[%s2525_s0 + $0x70] sm:$0xff]  ;;  %v1257_v19 = vld [vmem:[%s2525_s0 + $0xa8] sm:$0xff]  ;;  %vm247_vm13 = vcmask 1048488   ;;  %vm249_vm14 = vcmask 39936   ;;  %vm257_vm15 = vcmask 64552  }
   0x8   :  { %v1256_v20 = vld [vmem:[%s2525_s0 + $0xa0] sm:$0xff]  ;;  %v1261_v21 = vld [vmem:[%s2525_s0 + $0xc8] sm:$0xff]  ;;  %v1255_v23 = vld [vmem:[%s2525_s0 + $0x98] sm:$0xff]  ;;  %s1684_s18 = smov 126   ;;  %s1689_s7 = smov 90  }
   0x9   :  { %v1260_v22 = vld [vmem:[%s2525_s0 + $0xc0] sm:$0xff]  ;;  %v1254_v24 = vld [vmem:[%s2525_s0 + $0x90] sm:$0xff]  ;;  %v1265_v25 = vld [vmem:[%s2525_s0 + $0xe8] sm:$0xff]  ;;  %s1691_s10 = smov 52   ;;  %s1693_s15 = smov 123  }
   0xa   :  { %55 = vrot.lane.b32.xlu1 %v44_v5, %s1676_s23  ;;  %v1264_v26 = vld [vmem:[%s2525_s0 + $0xe0] sm:$0xff]  ;;  %v1259_v27 = vld [vmem:[%s2525_s0 + $0xb8] sm:$0xff]  ;;  %v1258_v28 = vld [vmem:[%s2525_s0 + $0xb0] sm:$0xff] }
   0xb   :  { %53 = vrot.lane.b32.xlu0 %v43_v6, %s1676_s23  ;;  %v1263_v29 = vld [vmem:[%s2525_s0 + $0xd8] sm:$0xff]  ;;  %v1262_v30 = vld [vmem:[%s2525_s0 + $0xd0] sm:$0xff] }
   0xc   :  { %v1267_v31 = vld [vmem:[%s2525_s0 + $0xf8] sm:$0xff]  ;;  %v1266_v32 = vld [vmem:[%s2525_s0 + $0xf0] sm:$0xff] }
   0xe   :  { %113 = vrot.lane.b32.xlu1 %v1245_v7, %s1677_s11 }
   0xf   :  { %111 = vrot.lane.b32.xlu0 %v1244_v8, %s1677_s11 }
  0x12   :  { %86 = vrot.lane.b32.xlu1 %v1243_v9, %s1675_s22 }
  0x13   :  { %84 = vrot.lane.b32.xlu0 %v1242_v10, %s1675_s22  ;;  %s1687_s22 = smov 14  }
  0x16   :  { %144 = vrot.lane.b32.xlu1 %v1249_v11, %s1678_s20 }
  0x17   :  { %142 = vrot.lane.b32.xlu0 %v1248_v12, %s1678_s20 }
  0x1a   :  { %117 = vrot.lane.b32.xlu1 %v1247_v13, %s1677_s11 }
  0x1b   :  { %115 = vrot.lane.b32.xlu0 %v1246_v14, %s1677_s11  ;;  %s1692_s11 = smov 33  }
  0x1e   :  { %175 = vrot.lane.b32.xlu1 %v1253_v15, %s1679_s30 }
  0x1f   :  { %173 = vrot.lane.b32.xlu0 %v1252_v16, %s1679_s30 }
  0x22   :  { %148 = vrot.lane.b32.xlu1 %v1251_v17, %s1678_s20 }
  0x23   :  { %146 = vrot.lane.b32.xlu0 %v1250_v18, %s1678_s20  ;;  %v1686_v18 = vmov 0  }
  0x24   :  { %1516 = vset.pattern.permute.xlu0 %v1686_v18  ;;  %1517 = vset.pattern.permute.xlu1 %v1686_v18 }
  0x26   :  { %206 = vrot.lane.b32.xlu1 %v1257_v19, %s1680_s14  ;;  %v28_v19 = vld [vmem:[%s2526_s2] sm:$0xff] }
  0x27   :  { %204 = vrot.lane.b32.xlu0 %v1256_v20, %s1680_s14  ;;  %v29_v20 = vld [vmem:[%s2526_s2 + $0x8] sm:$0xff] }
  0x2a   :  { %237 = vrot.lane.b32.xlu1 %v1261_v21, %s1681_s19  ;;  %v30_v21 = vld [vmem:[%s2526_s2 + $0x10] sm:$0xff] }
  0x2b   :  { %235 = vrot.lane.b32.xlu0 %v1260_v22, %s1681_s19  ;;  %v31_v22 = vld [vmem:[%s2526_s2 + $0x18] sm:$0xff]  ;;  %s1688_s2 = smov 109  }
  0x2e   :  { %179 = vrot.lane.b32.xlu1 %v1255_v23, %s1679_s30 }
  0x2f   :  { %177 = vrot.lane.b32.xlu0 %v1254_v24, %s1679_s30  ;;  %s1690_s30 = smov 71  }
  0x32   :  { %273 = vrot.lane.b32.xlu1 %v1265_v25, %s1682_s29 }
  0x33   :  { %271 = vrot.lane.b32.xlu0 %v1264_v26, %s1682_s29 }
  0x36   :  { %210 = vrot.lane.b32.xlu1 %v1259_v27, %s1680_s14 }
  0x37   :  { %208 = vrot.lane.b32.xlu0 %v1258_v28, %s1680_s14  ;;  %s1683_s14 = smov 127  }
  0x3a   :  { %241 = vrot.lane.b32.xlu1 %v1263_v29, %s1681_s19 }
  0x3b   :  { %239 = vrot.lane.b32.xlu0 %v1262_v30, %s1681_s19  ;;  %s1685_s19 = smov 125  }
  0x3e   :  { %277 = vrot.lane.b32.xlu1 %v1267_v31, %s1682_s29 }
  0x3f   :  { %275 = vrot.lane.b32.xlu0 %v1266_v32, %s1682_s29 }
  0x74   :  { %v81_v33 = vpop.permute.xlu1 %80 }
  0x75   :  { %v50_v34 = vpop.permute.xlu0 %49 }
  0x76   :  { %62 = vst.msk [vmem:[#allocation2] sm:$0xff] %vm61_vm1, %v50_v34 }
  0x77   :  { %67 = vst.msk [vmem:[#allocation2] sm:$0xff] %vm66_vm2, %v1674_v2 }
  0x78   :  { %93 = vst.msk [vmem:[#allocation2] sm:$0xff] %vm92_vm3, %v81_v33  ;;  %v83_v35 = vpop.permute.xlu1 %82 }
  0x79   :  { %v52_v36 = vpop.permute.xlu0 %51  ;;  %98 = vst.msk [vmem:[#allocation2] sm:$0xff] %vm97_vm4, %v1674_v2 }
  0x7a   :  { %63 = vst.msk [vmem:[#allocation2 + $0x10] sm:$0xff] %vm61_vm1, %v52_v36 }
  0x7b   :  { %68 = vst.msk [vmem:[#allocation2 + $0x10] sm:$0xff] %vm66_vm2, %v1674_v2 }
  0x7c   :  { %94 = vst.msk [vmem:[#allocation2 + $0x10] sm:$0xff] %vm92_vm3, %v83_v35  ;;  %v56_v37 = vpop.permute.xlu1 %55 }
  0x7d   :  { %v54_v38 = vpop.permute.xlu0 %53  ;;  %99 = vst.msk [vmem:[#allocation2 + $0x10] sm:$0xff] %vm97_vm4, %v1674_v2 }
  0x7e   :  { %65 = vst.msk [vmem:[#allocation2 + $0x30] sm:$0xff] %vm61_vm1, %v56_v37  ;;  %64 = vst.msk [vmem:[#allocation2 + $0x20] sm:$0xff] %vm61_vm1, %v54_v38  ;;  %vm283_vm1 = vcmask 195648  }
  0x7f   :  { %70 = vst.msk [vmem:[#allocation2 + $0x30] sm:$0xff] %vm66_vm2, %v1674_v2  ;;  %69 = vst.msk [vmem:[#allocation2 + $0x20] sm:$0xff] %vm66_vm2, %v1674_v2 }
  0x80   :  { %v114_v39 = vpop.permute.xlu1 %113 }
  0x81   :  { %v112_v40 = vpop.permute.xlu0 %111  ;;  %125 = vst.msk [vmem:[#allocation2 + $0x10] sm:$0xff] %vm123_vm5, %v114_v39 }
  0x82   :  { %124 = vst.msk [vmem:[#allocation2] sm:$0xff] %vm123_vm5, %v112_v40 }
  0x83   :  { %130 = vst.msk [vmem:[#allocation2 + $0x10] sm:$0xff] %vm128_vm6, %v1674_v2  ;;  %129 = vst.msk [vmem:[#allocation2] sm:$0xff] %vm128_vm6, %v1674_v2 }
  0x84   :  { %v87_v41 = vpop.permute.xlu1 %86 }
  0x85   :  { %v85_v42 = vpop.permute.xlu0 %84  ;;  %96 = vst.msk [vmem:[#allocation2 + $0x30] sm:$0xff] %vm92_vm3, %v87_v41 }
  0x86   :  { %95 = vst.msk [vmem:[#allocation2 + $0x20] sm:$0xff] %vm92_vm3, %v85_v42  ;;  %vm320_vm3 = vcmask 1039360  }
  0x87   :  { %101 = vst.msk [vmem:[#allocation2 + $0x30] sm:$0xff] %vm97_vm4, %v1674_v2  ;;  %100 = vst.msk [vmem:[#allocation2 + $0x20] sm:$0xff] %vm97_vm4, %v1674_v2 }
  0x88   :  { %v145_v43 = vpop.permute.xlu1 %144 }
  0x89   :  { %v143_v44 = vpop.permute.xlu0 %142  ;;  %156 = vst.msk [vmem:[#allocation2 + $0x10] sm:$0xff] %vm154_vm7, %v145_v43 }
  0x8a   :  { %155 = vst.msk [vmem:[#allocation2] sm:$0xff] %vm154_vm7, %v143_v44 }
  0x8b   :  { %161 = vst.msk [vmem:[#allocation2 + $0x10] sm:$0xff] %vm159_vm8, %v1674_v2  ;;  %160 = vst.msk [vmem:[#allocation2] sm:$0xff] %vm159_vm8, %v1674_v2 }
  0x8c   :  { %v118_v45 = vpop.permute.xlu1 %117 }
  0x8d   :  { %v116_v46 = vpop.permute.xlu0 %115  ;;  %127 = vst.msk [vmem:[#allocation2 + $0x30] sm:$0xff] %vm123_vm5, %v118_v45 }
  0x8e   :  { %126 = vst.msk [vmem:[#allocation2 + $0x20] sm:$0xff] %vm123_vm5, %v116_v46  ;;  %vm349_vm5 = vcmask 1031168  }
  0x8f   :  { %132 = vst.msk [vmem:[#allocation2 + $0x30] sm:$0xff] %vm128_vm6, %v1674_v2  ;;  %131 = vst.msk [vmem:[#allocation2 + $0x20] sm:$0xff] %vm128_vm6, %v1674_v2 }
  0x90   :  { %v176_v47 = vpop.permute.xlu1 %175 }
  0x91   :  { %v174_v48 = vpop.permute.xlu0 %173  ;;  %187 = vst.msk [vmem:[#allocation2 + $0x10] sm:$0xff] %vm185_vm9, %v176_v47 }
  0x92   :  { %186 = vst.msk [vmem:[#allocation2] sm:$0xff] %vm185_vm9, %v174_v48 }
  0x93   :  { %192 = vst.msk [vmem:[#allocation2 + $0x10] sm:$0xff] %vm190_vm10, %v1674_v2  ;;  %191 = vst.msk [vmem:[#allocation2] sm:$0xff] %vm190_vm10, %v1674_v2 }
  0x94   :  { %v149_v49 = vpop.permute.xlu1 %148 }
  0x95   :  { %v147_v50 = vpop.permute.xlu0 %146  ;;  %158 = vst.msk [vmem:[#allocation2 + $0x30] sm:$0xff] %vm154_vm7, %v149_v49 }
  0x96   :  { %157 = vst.msk [vmem:[#allocation2 + $0x20] sm:$0xff] %vm154_vm7, %v147_v50  ;;  %vm378_vm7 = vcmask 1022976  }
  0x97   :  { %163 = vst.msk [vmem:[#allocation2 + $0x30] sm:$0xff] %vm159_vm8, %v1674_v2  ;;  %162 = vst.msk [vmem:[#allocation2 + $0x20] sm:$0xff] %vm159_vm8, %v1674_v2 }
  0x98   :  { %v207_v51 = vpop.permute.xlu1 %206 }
  0x99   :  { %v205_v52 = vpop.permute.xlu0 %204  ;;  %218 = vst.msk [vmem:[#allocation2 + $0x10] sm:$0xff] %vm216_vm11, %v207_v51 }
  0x9a   :  { %217 = vst.msk [vmem:[#allocation2] sm:$0xff] %vm216_vm11, %v205_v52 }
  0x9b   :  { %223 = vst.msk [vmem:[#allocation2 + $0x10] sm:$0xff] %vm221_vm12, %v1674_v2  ;;  %222 = vst.msk [vmem:[#allocation2] sm:$0xff] %vm221_vm12, %v1674_v2 }
  0x9c   :  { %v238_v53 = vpop.permute.xlu1 %237 }
  0x9d   :  { %v236_v54 = vpop.permute.xlu0 %235  ;;  %251 = vst.msk [vmem:[#allocation2 + $0x10] sm:$0xff] %vm247_vm13, %v238_v53 }
  0x9e   :  { %252 = vst.msk [vmem:[#allocation2 + $0x18] sm:$0xff] %vm249_vm14, %v238_v53  ;;  %250 = vst.msk [vmem:[#allocation2 + $0x8] sm:$0xff] %vm249_vm14, %v236_v54 }
  0x9f   :  { %248 = vst.msk [vmem:[#allocation2] sm:$0xff] %vm247_vm13, %v236_v54 }
  0xa0   :  { %259 = vst.msk [vmem:[#allocation2 + $0x18] sm:$0xff] %vm257_vm15, %v1674_v2  ;;  %258 = vst.msk [vmem:[#allocation2 + $0x8] sm:$0xff] %vm257_vm15, %v1674_v2  ;;  %v180_v55 = vpop.permute.xlu1 %179 }
  0xa1   :  { %v178_v56 = vpop.permute.xlu0 %177  ;;  %189 = vst.msk [vmem:[#allocation2 + $0x30] sm:$0xff] %vm185_vm9, %v180_v55 }
  0xa2   :  { %188 = vst.msk [vmem:[#allocation2 + $0x20] sm:$0xff] %vm185_vm9, %v178_v56 }
  0xa3   :  { %194 = vst.msk [vmem:[#allocation2 + $0x30] sm:$0xff] %vm190_vm10, %v1674_v2  ;;  %193 = vst.msk [vmem:[#allocation2 + $0x20] sm:$0xff] %vm190_vm10, %v1674_v2 }
  0xa4   :  { %v274_v57 = vpop.permute.xlu1 %273  ;;  %v290_v61 = vld [vmem:[#allocation2 + $0x10] sm:$0xff] }
  0xa5   :  { %v272_v58 = vpop.permute.xlu0 %271  ;;  %285 = vst.msk [vmem:[#allocation2 + $0x18] sm:$0xff] %vm283_vm1, %v274_v57 }
  0xa6   :  { %284 = vst.msk [vmem:[#allocation2 + $0x8] sm:$0xff] %vm283_vm1, %v272_v58  ;;  %v288_v1 = vld [vmem:[#allocation2] sm:$0xff] }
  0xa7   :  { %v1374_v7 = vpack.c.bf16 %v290_v61, %v288_v1 }
  0xa8   :  { %v211_v59 = vpop.permute.xlu1 %210 }
  0xa9   :  { %v209_v60 = vpop.permute.xlu0 %208  ;;  %220 = vst.msk [vmem:[#allocation2 + $0x30] sm:$0xff] %vm216_vm11, %v211_v59 }
  0xaa   :  { %219 = vst.msk [vmem:[#allocation2 + $0x20] sm:$0xff] %vm216_vm11, %v209_v60 }
  0xab   :  { %225 = vst.msk [vmem:[#allocation2 + $0x30] sm:$0xff] %vm221_vm12, %v1674_v2  ;;  %224 = vst.msk [vmem:[#allocation2 + $0x20] sm:$0xff] %vm221_vm12, %v1674_v2 }
  0xac   :  { %v242_v62 = vpop.permute.xlu1 %241  ;;  %v291_v0 = vld [vmem:[#allocation2 + $0x18] sm:$0xff] }
  0xad   :  { %v240_v63 = vpop.permute.xlu0 %239  ;;  %v289_v3 = vld [vmem:[#allocation2 + $0x8] sm:$0xff]  ;;  %255 = vst.msk [vmem:[#allocation2 + $0x30] sm:$0xff] %vm247_vm13, %v242_v62  ;;  %v1461_v4 = vpack.i.bf16 %v291_v0, %v290_v61 }
  0xae   :  { %256 = vst.msk [vmem:[#allocation2 + $0x38] sm:$0xff] %vm249_vm14, %v242_v62  ;;  %254 = vst.msk [vmem:[#allocation2 + $0x28] sm:$0xff] %vm249_vm14, %v240_v63  ;;  %v1456_v5 = vpack.i.bf16 %v289_v3, %v288_v1  ;;  %v1372_v6 = vpack.c.bf16 %v291_v0, %v289_v3 }
  0xaf   :  { %253 = vst.msk [vmem:[#allocation2 + $0x20] sm:$0xff] %vm247_vm13, %v240_v63  ;;  %1462 = vrot.lane.b32.xlu1 %v1461_v4, %s1683_s14 }
  0xb0   :  { %261 = vst.msk [vmem:[#allocation2 + $0x38] sm:$0xff] %vm257_vm15, %v1674_v2  ;;  %260 = vst.msk [vmem:[#allocation2 + $0x28] sm:$0xff] %vm257_vm15, %v1674_v2  ;;  %1457 = vrot.lane.b32.xlu0 %v1456_v5, %s1683_s14  ;;  %1373 = vmatprep.subr.bf16.mxu0 %v1372_v6  ;;  %v278_v8 = vpop.permute.xlu1 %277 }
  0xb1   :  { %v276_v9 = vpop.permute.xlu0 %275  ;;  %287 = vst.msk [vmem:[#allocation2 + $0x38] sm:$0xff] %vm283_vm1, %v278_v8  ;;  %1375 = vmatpush1.bf16.msra.mxu0 %v1374_v7 }
  0xb2   :  { %286 = vst.msk [vmem:[#allocation2 + $0x28] sm:$0xff] %vm283_vm1, %v276_v9 }
  0xb4   :  { %v294_v10 = vld [vmem:[#allocation2 + $0x30] sm:$0xff] }
  0xb6   :  { %v292_v12 = vld [vmem:[#allocation2 + $0x20] sm:$0xff] }
  0xb7   :  { %v1378_v17 = vpack.c.bf16 %v294_v10, %v292_v12 }
  0xb8   :  { %v295_v11 = vld [vmem:[#allocation2 + $0x38] sm:$0xff] }
  0xb9   :  { %v293_v13 = vld [vmem:[#allocation2 + $0x28] sm:$0xff]  ;;  %v1471_v14 = vpack.i.bf16 %v295_v11, %v294_v10 }
  0xba   :  { %v1466_v15 = vpack.i.bf16 %v293_v13, %v292_v12  ;;  %v1376_v16 = vpack.c.bf16 %v295_v11, %v293_v13 }
  0xbb   :  { %1472 = vrot.lane.b32.xlu1 %v1471_v14, %s1683_s14 }
  0xbc   :  { %1467 = vrot.lane.b32.xlu0 %v1466_v15, %s1683_s14  ;;  %1377 = vmatprep.subr.bf16.mxu0 %v1376_v16 }
  0xbd   :  { %1379 = vmatpush1.bf16.msra.mxu0 %v1378_v17 }
  0xbf   :  { %1482 = vrot.lane.b32.xlu1 %v1461_v4, %s1684_s18 }
  0xc0   :  { %1477 = vrot.lane.b32.xlu0 %v1456_v5, %s1684_s18 }
  0xc3   :  { %1492 = vrot.lane.b32.xlu1 %v1471_v14, %s1684_s18 }
  0xc4   :  { %1487 = vrot.lane.b32.xlu0 %v1466_v15, %s1684_s18 }
  0xc7   :  { %1502 = vrot.lane.b32.xlu1 %v1461_v4, %s1685_s19 }
  0xc8   :  { %1497 = vrot.lane.b32.xlu0 %v1456_v5, %s1685_s19 }
  0xcb   :  { %1512 = vrot.lane.b32.xlu1 %v1471_v14, %s1685_s19 }
  0xcc   :  { %1507 = vrot.lane.b32.xlu0 %v1466_v15, %s1685_s19 }
  0xcf   :  { %398 = vperm.xlu1 %1517, %v29_v20   ;;  %v20_v20 = vld [vmem:[%s2527_s1] sm:$0xff] }
  0xd0   :  { %393 = vperm.xlu0 %1516, %v28_v19  }
  0xd3   :  { %403 = vperm.xlu1 %1517, %v30_v21   ;;  %v21_v21 = vld [vmem:[%s2527_s1 + $0x8] sm:$0xff] }
  0xd4   :  { %408 = vperm.xlu0 %1516, %v31_v22   ;;  %v22_v22 = vld [vmem:[%s2527_s1 + $0x10] sm:$0xff] }
 0x121   :  { %v1463_v23 = vpop.permute.xlu1 %1462 }
 0x122   :  { %v1458_v24 = vpop.permute.xlu0 %1457  ;;  %v1465_v25 = vunpack.i.h.bf16 %v1463_v23  ;;  %v1464_v26 = vunpack.i.l.bf16 %v1463_v23  ;;  %v23_v23 = vld [vmem:[%s2527_s1 + $0x18] sm:$0xff] }
 0x123   :  { %v1460_v27 = vunpack.i.h.bf16 %v1458_v24  ;;  %v1459_v28 = vunpack.i.l.bf16 %v1458_v24 }
 0x124   :  { %v322_v31 = vsel %vm320_vm3, %v1464_v26, %v1465_v25 }
 0x125   :  { %v1380_v29 = vpack.c.bf16 %v1465_v25, %v1460_v27  ;;  %v321_v30 = vsel %vm320_vm3, %v1459_v28, %v1460_v27 }
 0x126   :  { %v1382_v32 = vpack.c.bf16 %v322_v31, %v321_v30 }
 0x127   :  { %1381 = vmatprep.subr.bf16.mxu0 %v1380_v29 }
 0x128   :  { %1383 = vmatpush1.bf16.msra.mxu0 %v1382_v32 }
 0x12d   :  { %v1473_v33 = vpop.permute.xlu1 %1472 }
 0x12e   :  { %v1468_v34 = vpop.permute.xlu0 %1467  ;;  %v1475_v35 = vunpack.i.h.bf16 %v1473_v33  ;;  %v1474_v36 = vunpack.i.l.bf16 %v1473_v33 }
 0x12f   :  { %v1470_v37 = vunpack.i.h.bf16 %v1468_v34  ;;  %v1469_v38 = vunpack.i.l.bf16 %v1468_v34 }
 0x130   :  { %v324_v41 = vsel %vm320_vm3, %v1474_v36, %v1475_v35 }
 0x131   :  { %v1384_v39 = vpack.c.bf16 %v1475_v35, %v1470_v37  ;;  %v323_v40 = vsel %vm320_vm3, %v1469_v38, %v1470_v37  ;;  %v1483_v42 = vpop.permute.xlu1 %1482 }
 0x132   :  { %v1478_v43 = vpop.permute.xlu0 %1477  ;;  %v1386_v44 = vpack.c.bf16 %v324_v41, %v323_v40  ;;  %v1485_v45 = vunpack.i.h.bf16 %v1483_v42  ;;  %v1484_v46 = vunpack.i.l.bf16 %v1483_v42 }
 0x133   :  { %v1480_v47 = vunpack.i.h.bf16 %v1478_v43  ;;  %v1479_v48 = vunpack.i.l.bf16 %v1478_v43  ;;  %1385 = vmatprep.subr.bf16.mxu0 %v1384_v39 }
 0x134   :  { %1387 = vmatpush1.bf16.msra.mxu0 %v1386_v44  ;;  %v351_v51 = vsel %vm349_vm5, %v1484_v46, %v1485_v45 }
 0x135   :  { %v1388_v49 = vpack.c.bf16 %v1485_v45, %v1480_v47  ;;  %v350_v50 = vsel %vm349_vm5, %v1479_v48, %v1480_v47  ;;  %v1493_v52 = vpop.permute.xlu1 %1492 }
 0x136   :  { %v1488_v53 = vpop.permute.xlu0 %1487  ;;  %v1390_v54 = vpack.c.bf16 %v351_v51, %v350_v50  ;;  %v1495_v55 = vunpack.i.h.bf16 %v1493_v52  ;;  %v1494_v56 = vunpack.i.l.bf16 %v1493_v52 }
 0x137   :  { %v1490_v57 = vunpack.i.h.bf16 %v1488_v53  ;;  %v1489_v58 = vunpack.i.l.bf16 %v1488_v53  ;;  %1389 = vmatprep.subr.bf16.mxu0 %v1388_v49 }
 0x138   :  { %1391 = vmatpush1.bf16.msra.mxu0 %v1390_v54  ;;  %v353_v61 = vsel %vm349_vm5, %v1494_v56, %v1495_v55 }
 0x139   :  { %v1392_v59 = vpack.c.bf16 %v1495_v55, %v1490_v57  ;;  %v352_v60 = vsel %vm349_vm5, %v1489_v58, %v1490_v57  ;;  %v1503_v62 = vpop.permute.xlu1 %1502 }
 0x13a   :  { %v1498_v63 = vpop.permute.xlu0 %1497  ;;  %v1394_v0 = vpack.c.bf16 %v353_v61, %v352_v60  ;;  %v1505_v1 = vunpack.i.h.bf16 %v1503_v62  ;;  %v1504_v3 = vunpack.i.l.bf16 %v1503_v62 }
 0x13b   :  { %v1500_v4 = vunpack.i.h.bf16 %v1498_v63  ;;  %v1499_v5 = vunpack.i.l.bf16 %v1498_v63  ;;  %1393 = vmatprep.subr.bf16.mxu0 %v1392_v59 }
 0x13c   :  { %1395 = vmatpush1.bf16.msra.mxu0 %v1394_v0  ;;  %v380_v8 = vsel %vm378_vm7, %v1504_v3, %v1505_v1 }
 0x13d   :  { %v1396_v6 = vpack.c.bf16 %v1505_v1, %v1500_v4  ;;  %v379_v7 = vsel %vm378_vm7, %v1499_v5, %v1500_v4  ;;  %v1513_v9 = vpop.permute.xlu1 %1512 }
 0x13e   :  { %v1508_v10 = vpop.permute.xlu0 %1507  ;;  %v1398_v11 = vpack.c.bf16 %v380_v8, %v379_v7  ;;  %v1515_v12 = vunpack.i.h.bf16 %v1513_v9  ;;  %v1514_v13 = vunpack.i.l.bf16 %v1513_v9 }
 0x13f   :  { %v1510_v14 = vunpack.i.h.bf16 %v1508_v10  ;;  %v1509_v15 = vunpack.i.l.bf16 %v1508_v10  ;;  %1397 = vmatprep.subr.bf16.mxu0 %v1396_v6 }
 0x140   :  { %1399 = vmatpush1.bf16.msra.mxu0 %v1398_v11  ;;  %v382_v18 = vsel %vm378_vm7, %v1514_v13, %v1515_v12 }
 0x141   :  { %v1400_v16 = vpack.c.bf16 %v1515_v12, %v1510_v14  ;;  %v381_v17 = vsel %vm378_vm7, %v1509_v15, %v1510_v14 }
 0x142   :  { %v1402_v19 = vpack.c.bf16 %v382_v18, %v381_v17 }
 0x143   :  { %1401 = vmatprep.subr.bf16.mxu0 %v1400_v16 }
 0x144   :  { %1403 = vmatpush1.bf16.msra.mxu0 %v1402_v19 }
 0x147   :  { %476 = vmatmul.mubr.f32.vlgmr.msra.gmra.mrb[0].mxu0 %v20_v20 }
 0x148   :  { %481 = vmatprep.mubr.f32.mxu0 %v1674_v2 }
 0x14b   :  { %482 = vmatmul.mubr.f32.gmra.mrb[2].mxu0 %v21_v21 }
 0x14c   :  { %487 = vmatprep.mubr.f32.mxu0 %v1674_v2 }
 0x14e   :  { %v399_v26 = vpop.permute.xlu1 %398 }
 0x14f   :  { %488 = vmatmul.mubr.f32.gmra.mrb[4].mxu0 %v22_v22  ;;  %v394_v24 = vpop.permute.xlu0 %393 }
 0x150   :  { %493 = vmatprep.mubr.f32.mxu0 %v1674_v2 }
 0x152   :  { %v404_v34 = vpop.permute.xlu1 %403 }
 0x153   :  { %494 = vmatmul.mubr.f32.gmra.mrb[6].mxu0 %v23_v23  ;;  %v409_v44 = vpop.permute.xlu0 %408 }
 0x21a   :  { %v477_v25 = vpop.f32.mrb[0].mxu0 }
 0x21b   :  { %v478_v27 = vadd.f32 %v477_v25, %v394_v24  ;;  %v479_v28 = vpop.f32.mrb[1].mxu0 }
 0x21c   :  { %v480_v30 = vadd.f32 %v479_v28, %v394_v24 }
 0x21d   :  { %v508_v29 = vmul.f32 1.442695, %v478_v27  ;;  %vm500_vm9 = vcmp.gt.f32.partialorder %v478_v27, 0.0 }
 0x21e   :  { %v483_v31 = vpop.f32.mrb[2].mxu0  ;;  %v510_v37 = vmul.f32 1.442695, %v480_v30  ;;  %vm501_vm1 = vcmp.gt.f32.partialorder %v480_v30, 0.0 }
 0x21f   :  { %1578 = vpow2.f32 %v508_v29  ;;  %v484_v32 = vadd.f32 %v483_v31, %v399_v26  ;;  %v485_v33 = vpop.f32.mrb[3].mxu0 }
 0x220   :  { %v486_v36 = vadd.f32 %v485_v33, %v399_v26 }
 0x221   :  { %v512_v35 = vmul.f32 1.442695, %v484_v32  ;;  %vm502_vm11 = vcmp.gt.f32.partialorder %v484_v32, 0.0 }
 0x222   :  { %v489_v38 = vpop.f32.mrb[4].mxu0  ;;  %v514_v42 = vmul.f32 1.442695, %v486_v36 }
 0x223   :  { %1580 = vpow2.f32 %v512_v35  ;;  %v490_v39 = vadd.f32 %v489_v38, %v404_v34  ;;  %v491_v40 = vpop.f32.mrb[5].mxu0 }
 0x224   :  { %v492_v41 = vadd.f32 %v491_v40, %v404_v34  ;;  %1582 = vpow2.f32 %v510_v37 }
 0x225   :  { %v516_v43 = vmul.f32 1.442695, %v490_v39  ;;  %vm504_vm13 = vcmp.gt.f32.partialorder %v490_v39, 0.0 }
 0x226   :  { %v518_v45 = vmul.f32 1.442695, %v492_v41  ;;  %v495_v46 = vpop.f32.mrb[6].mxu0 }
 0x227   :  { %1584 = vpow2.f32 %v516_v43  ;;  %v496_v47 = vadd.f32 %v495_v46, %v409_v44  ;;  %v497_v48 = vpop.f32.mrb[7].mxu0  ;;  %v34_v43 = vld [vmem:[%s2528_s4 + $0x10] sm:$0xff] }
 0x228   :  { %v498_v49 = vadd.f32 %v497_v48, %v409_v44  ;;  %1586 = vpow2.f32 %v514_v42  ;;  %v33_v42 = vld [vmem:[%s2528_s4 + $0x8] sm:$0xff]  ;;  %v35_v44 = vld [vmem:[%s2528_s4 + $0x18] sm:$0xff] }
 0x229   :  { %v1579_v50 = vpop.eup %1578  ;;  %v520_v51 = vmul.f32 1.442695, %v496_v47  ;;  %1588 = vpow2.f32 %v518_v45  ;;  %vm506_vm14 = vcmp.gt.f32.partialorder %v496_v47, 0.0 }
 0x22a   :  { %v1268_v52 = vadd.f32 -1.0, %v1579_v50  ;;  %v522_v53 = vmul.f32 1.442695, %v498_v49 }
 0x22b   :  { %1590 = vpow2.f32 %v520_v51 }
 0x22c   :  { %v532_v54 = vsel %vm500_vm9, %v478_v27, %v1268_v52  ;;  %1592 = vpow2.f32 %v522_v53  ;;  %vm503_vm9 = vcmp.gt.f32.partialorder %v486_v36, 0.0 }
 0x22d   :  { %v1581_v55 = vpop.eup %1580  ;;  %548 = vrot.lane.b32.xlu1 %v532_v54, %s1676_s23 }
 0x22e   :  { %v1270_v56 = vadd.f32 -1.0, %v1581_v55  ;;  %v1583_v57 = vpop.eup %1582 }
 0x22f   :  { %v1269_v0 = vadd.f32 -1.0, %v1583_v57 }
 0x230   :  { %v534_v58 = vsel %vm502_vm11, %v484_v32, %v1270_v56  ;;  %vm505_vm11 = vcmp.gt.f32.partialorder %v492_v41, 0.0 }
 0x231   :  { %v1585_v59 = vpop.eup %1584  ;;  %552 = vrot.lane.b32.xlu0 %v534_v58, %s1676_s23  ;;  %v533_v5 = vsel %vm501_vm1, %v480_v30, %v1269_v0  ;;  %vm578_vm1 = vcmask 195584  }
 0x232   :  { %v1272_v60 = vadd.f32 -1.0, %v1585_v59  ;;  %v1587_v61 = vpop.eup %1586 }
 0x233   :  { %v1589_v62 = vpop.eup %1588  ;;  %v1271_v6 = vadd.f32 -1.0, %v1587_v61 }
 0x234   :  { %v536_v63 = vsel %vm504_vm13, %v490_v39, %v1272_v60  ;;  %v1273_v7 = vadd.f32 -1.0, %v1589_v62  ;;  %vm507_vm13 = vcmp.gt.f32.partialorder %v498_v49, 0.0 }
 0x235   :  { %v1591_v1 = vpop.eup %1590  ;;  %556 = vrot.lane.b32.xlu1 %v536_v63, %s1676_s23  ;;  %v535_v9 = vsel %vm503_vm9, %v486_v36, %v1271_v6 }
 0x236   :  { %v1274_v3 = vadd.f32 -1.0, %v1591_v1  ;;  %v1593_v8 = vpop.eup %1592  ;;  %v537_v10 = vsel %vm505_vm11, %v492_v41, %v1273_v7  ;;  %v32_v41 = vld [vmem:[%s2528_s4] sm:$0xff] }
 0x237   :  { %v1275_v11 = vadd.f32 -1.0, %v1593_v8 }
 0x238   :  { %v538_v4 = vsel %vm506_vm14, %v496_v47, %v1274_v3  ;;  %vm576_vm14 = vcmask 1047576  }
 0x239   :  { %560 = vrot.lane.b32.xlu0 %v538_v4, %s1676_s23  ;;  %550 = vrot.lane.b32.xlu1 %v533_v5, %s1676_s23  ;;  %v539_v12 = vsel %vm507_vm13, %v498_v49, %v1275_v11  ;;  %vm1153_vm13 = vcmask 113664  }
 0x23d   :  { %554 = vrot.lane.b32.xlu0 %v535_v9, %s1676_s23  ;;  %558 = vrot.lane.b32.xlu1 %v537_v10, %s1676_s23 }
 0x241   :  { %562 = vrot.lane.b32.xlu0 %v539_v12, %s1676_s23 }
 0x29f   :  { %v549_v13 = vpop.permute.xlu1 %548 }
 0x2a0   :  { %577 = vst.msk [vmem:[#allocation3] sm:$0xff] %vm576_vm14, %v549_v13 }
 0x2a1   :  { %586 = vst.msk [vmem:[#allocation3] sm:$0xff] %vm36_vm0, %v1674_v2 }
 0x2a2   :  { %590 = vst.msk [vmem:[#allocation3] sm:$0xff] %vm66_vm2, %v1674_v2 }
 0x2a3   :  { %594 = vst.msk [vmem:[#allocation3] sm:$0xff] %vm97_vm4, %v1674_v2  ;;  %v553_v14 = vpop.permute.xlu0 %552 }
 0x2a4   :  { %598 = vst.msk [vmem:[#allocation3] sm:$0xff] %vm128_vm6, %v1674_v2 }
 0x2a5   :  { %580 = vst.msk [vmem:[#allocation3 + $0x10] sm:$0xff] %vm576_vm14, %v553_v14 }
 0x2a6   :  { %602 = vst.msk [vmem:[#allocation3] sm:$0xff] %vm159_vm8, %v1674_v2 }
 0x2a7   :  { %587 = vst.msk [vmem:[#allocation3 + $0x10] sm:$0xff] %vm36_vm0, %v1674_v2  ;;  %v557_v15 = vpop.permute.xlu1 %556 }
 0x2a8   :  { %606 = vst.msk [vmem:[#allocation3] sm:$0xff] %vm190_vm10, %v1674_v2 }
 0x2a9   :  { %591 = vst.msk [vmem:[#allocation3 + $0x10] sm:$0xff] %vm66_vm2, %v1674_v2 }
 0x2aa   :  { %610 = vst.msk [vmem:[#allocation3] sm:$0xff] %vm221_vm12, %v1674_v2 }
 0x2ab   :  { %595 = vst.msk [vmem:[#allocation3 + $0x10] sm:$0xff] %vm97_vm4, %v1674_v2  ;;  %v561_v16 = vpop.permute.xlu0 %560  ;;  %v551_v17 = vpop.permute.xlu1 %550 }
 0x2ac   :  { %599 = vst.msk [vmem:[#allocation3 + $0x10] sm:$0xff] %vm128_vm6, %v1674_v2  ;;  %v564_v18 = vsel %vm36_vm0, %v549_v13, %v551_v17 }
 0x2ad   :  { %582 = vst.msk [vmem:[#allocation3 + $0x20] sm:$0xff] %vm576_vm14, %v557_v15  ;;  %584 = vst.msk [vmem:[#allocation3 + $0x30] sm:$0xff] %vm576_vm14, %v561_v16 }
 0x2ae   :  { %603 = vst.msk [vmem:[#allocation3 + $0x10] sm:$0xff] %vm159_vm8, %v1674_v2 }
 0x2af   :  { %588 = vst.msk [vmem:[#allocation3 + $0x20] sm:$0xff] %vm36_vm0, %v1674_v2  ;;  %589 = vst.msk [vmem:[#allocation3 + $0x30] sm:$0xff] %vm36_vm0, %v1674_v2  ;;  %v555_v19 = vpop.permute.xlu0 %554  ;;  %v559_v20 = vpop.permute.xlu1 %558 }
 0x2b0   :  { %607 = vst.msk [vmem:[#allocation3 + $0x10] sm:$0xff] %vm190_vm10, %v1674_v2  ;;  %v565_v21 = vsel %vm36_vm0, %v553_v14, %v555_v19  ;;  %v566_v22 = vsel %vm36_vm0, %v557_v15, %v559_v20 }
 0x2b1   :  { %592 = vst.msk [vmem:[#allocation3 + $0x20] sm:$0xff] %vm66_vm2, %v1674_v2  ;;  %593 = vst.msk [vmem:[#allocation3 + $0x30] sm:$0xff] %vm66_vm2, %v1674_v2  ;;  %v618_v24 = vld [vmem:[#allocation3] sm:$0xff] }
 0x2b2   :  { %611 = vst.msk [vmem:[#allocation3 + $0x10] sm:$0xff] %vm221_vm12, %v1674_v2 }
 0x2b3   :  { %596 = vst.msk [vmem:[#allocation3 + $0x20] sm:$0xff] %vm97_vm4, %v1674_v2  ;;  %597 = vst.msk [vmem:[#allocation3 + $0x30] sm:$0xff] %vm97_vm4, %v1674_v2  ;;  %v563_v23 = vpop.permute.xlu0 %562 }
 0x2b4   :  { %600 = vst.msk [vmem:[#allocation3 + $0x20] sm:$0xff] %vm128_vm6, %v1674_v2  ;;  %601 = vst.msk [vmem:[#allocation3 + $0x30] sm:$0xff] %vm128_vm6, %v1674_v2  ;;  %v567_v25 = vsel %vm36_vm0, %v561_v16, %v563_v23 }
 0x2b5   :  { %604 = vst.msk [vmem:[#allocation3 + $0x20] sm:$0xff] %vm159_vm8, %v1674_v2  ;;  %605 = vst.msk [vmem:[#allocation3 + $0x30] sm:$0xff] %vm159_vm8, %v1674_v2 }
 0x2b6   :  { %579 = vst.msk [vmem:[#allocation3 + $0x8] sm:$0xff] %vm578_vm1, %v564_v18  ;;  %581 = vst.msk [vmem:[#allocation3 + $0x18] sm:$0xff] %vm578_vm1, %v565_v21 }
 0x2b7   :  { %608 = vst.msk [vmem:[#allocation3 + $0x20] sm:$0xff] %vm190_vm10, %v1674_v2  ;;  %609 = vst.msk [vmem:[#allocation3 + $0x30] sm:$0xff] %vm190_vm10, %v1674_v2  ;;  %vm895_vm10 = vcmask 130048  }
 0x2b8   :  { %614 = vst.msk [vmem:[#allocation3 + $0x8] sm:$0xff] %vm257_vm15, %v1674_v2  ;;  %615 = vst.msk [vmem:[#allocation3 + $0x18] sm:$0xff] %vm257_vm15, %v1674_v2 }
 0x2b9   :  { %612 = vst.msk [vmem:[#allocation3 + $0x20] sm:$0xff] %vm221_vm12, %v1674_v2  ;;  %613 = vst.msk [vmem:[#allocation3 + $0x30] sm:$0xff] %vm221_vm12, %v1674_v2  ;;  %v620_v28 = vld [vmem:[#allocation3 + $0x10] sm:$0xff] }
 0x2ba   :  { %583 = vst.msk [vmem:[#allocation3 + $0x28] sm:$0xff] %vm578_vm1, %v566_v22  ;;  %585 = vst.msk [vmem:[#allocation3 + $0x38] sm:$0xff] %vm578_vm1, %v567_v25  ;;  %v1406_v34 = vpack.c.bf16 %v620_v28, %v618_v24 }
 0x2bb   :  { %616 = vst.msk [vmem:[#allocation3 + $0x28] sm:$0xff] %vm257_vm15, %v1674_v2  ;;  %617 = vst.msk [vmem:[#allocation3 + $0x38] sm:$0xff] %vm257_vm15, %v1674_v2 }
 0x2bf   :  { %v619_v26 = vld [vmem:[#allocation3 + $0x8] sm:$0xff]  ;;  %v621_v30 = vld [vmem:[#allocation3 + $0x18] sm:$0xff] }
 0x2c0   :  { %v1518_v27 = vpack.i.bf16 %v619_v26, %v618_v24  ;;  %v622_v29 = vld [vmem:[#allocation3 + $0x20] sm:$0xff]  ;;  %v1523_v32 = vpack.i.bf16 %v621_v30, %v620_v28  ;;  %v624_v35 = vld [vmem:[#allocation3 + $0x30] sm:$0xff]  ;;  %v1404_v36 = vpack.c.bf16 %v621_v30, %v619_v26 }
 0x2c1   :  { %v1410_v40 = vpack.c.bf16 %v624_v35, %v622_v29 }
 0x2c2   :  { %1519 = vrot.lane.b32.xlu1 %v1518_v27, %s1683_s14  ;;  %v623_v31 = vld [vmem:[#allocation3 + $0x28] sm:$0xff]  ;;  %1524 = vrot.lane.b32.xlu0 %v1523_v32, %s1683_s14  ;;  %v625_v37 = vld [vmem:[#allocation3 + $0x38] sm:$0xff] }
 0x2c3   :  { %v1528_v33 = vpack.i.bf16 %v623_v31, %v622_v29  ;;  %1405 = vmatprep.subr.bf16.mxu1 %v1404_v36  ;;  %v1538_v38 = vpack.i.bf16 %v625_v37, %v624_v35  ;;  %v1408_v39 = vpack.c.bf16 %v625_v37, %v623_v31 }
 0x2c4   :  { %1407 = vmatpush1.bf16.msra.mxu1 %v1406_v34 }
 0x2c5   :  { %1409 = vmatprep.subr.bf16.mxu1 %v1408_v39 }
 0x2c6   :  { %1529 = vrot.lane.b32.xlu1 %v1528_v33, %s1683_s14  ;;  %1539 = vrot.lane.b32.xlu0 %v1538_v38, %s1683_s14 }
 0x2c8   :  { %1411 = vmatpush1.bf16.msra.mxu1 %v1410_v40 }
 0x2ca   :  { %1534 = vrot.lane.b32.xlu1 %v1518_v27, %s1684_s18  ;;  %1544 = vrot.lane.b32.xlu0 %v1523_v32, %s1684_s18 }
 0x2ce   :  { %1549 = vrot.lane.b32.xlu1 %v1528_v33, %s1684_s18  ;;  %1559 = vrot.lane.b32.xlu0 %v1538_v38, %s1684_s18 }
 0x2d2   :  { %1554 = vrot.lane.b32.xlu1 %v1518_v27, %s1685_s19  ;;  %1564 = vrot.lane.b32.xlu0 %v1523_v32, %s1685_s19 }
 0x2d6   :  { %1569 = vrot.lane.b32.xlu1 %v1528_v33, %s1685_s19  ;;  %1574 = vrot.lane.b32.xlu0 %v1538_v38, %s1685_s19 }
 0x2da   :  { %720 = vperm.xlu1 %1517, %v32_v41   ;;  %725 = vperm.xlu0 %1516, %v33_v42   ;;  %v24_v42 = vld [vmem:[%s2529_s3] sm:$0xff] }
 0x2de   :  { %730 = vperm.xlu1 %1517, %v34_v43   ;;  %735 = vperm.xlu0 %1516, %v35_v44   ;;  %v25_v43 = vld [vmem:[%s2529_s3 + $0x8] sm:$0xff]  ;;  %v26_v44 = vld [vmem:[%s2529_s3 + $0x10] sm:$0xff] }
 0x334   :  { %v1520_v45 = vpop.permute.xlu1 %1519  ;;  %v1525_v48 = vpop.permute.xlu0 %1524 }
 0x335   :  { %v1522_v46 = vunpack.i.h.bf16 %v1520_v45  ;;  %v1521_v47 = vunpack.i.l.bf16 %v1520_v45  ;;  %v1527_v51 = vunpack.i.h.bf16 %v1525_v48  ;;  %v1526_v52 = vunpack.i.l.bf16 %v1525_v48  ;;  %v27_v45 = vld [vmem:[%s2529_s3 + $0x18] sm:$0xff] }
 0x337   :  { %v650_v50 = vsel %vm320_vm3, %v1521_v47, %v1522_v46  ;;  %v1412_v55 = vpack.c.bf16 %v1527_v51, %v1522_v46  ;;  %v651_v56 = vsel %vm320_vm3, %v1526_v52, %v1527_v51 }
 0x338   :  { %v1530_v49 = vpop.permute.xlu1 %1529  ;;  %v1540_v57 = vpop.permute.xlu0 %1539  ;;  %v1414_v58 = vpack.c.bf16 %v651_v56, %v650_v50 }
 0x339   :  { %v1532_v53 = vunpack.i.h.bf16 %v1530_v49  ;;  %v1531_v54 = vunpack.i.l.bf16 %v1530_v49  ;;  %v1542_v61 = vunpack.i.h.bf16 %v1540_v57  ;;  %v1541_v62 = vunpack.i.l.bf16 %v1540_v57  ;;  %1413 = vmatprep.subr.bf16.mxu1 %v1412_v55 }
 0x33a   :  { %1415 = vmatpush1.bf16.msra.mxu1 %v1414_v58 }
 0x33b   :  { %v652_v60 = vsel %vm320_vm3, %v1531_v54, %v1532_v53  ;;  %v1416_v1 = vpack.c.bf16 %v1542_v61, %v1532_v53  ;;  %v653_v3 = vsel %vm320_vm3, %v1541_v62, %v1542_v61 }
 0x33c   :  { %v1535_v59 = vpop.permute.xlu1 %1534  ;;  %v1545_v4 = vpop.permute.xlu0 %1544  ;;  %v1418_v5 = vpack.c.bf16 %v653_v3, %v652_v60 }
 0x33d   :  { %v1537_v63 = vunpack.i.h.bf16 %v1535_v59  ;;  %v1536_v0 = vunpack.i.l.bf16 %v1535_v59  ;;  %v1547_v8 = vunpack.i.h.bf16 %v1545_v4  ;;  %v1546_v9 = vunpack.i.l.bf16 %v1545_v4  ;;  %1417 = vmatprep.subr.bf16.mxu1 %v1416_v1 }
 0x33e   :  { %1419 = vmatpush1.bf16.msra.mxu1 %v1418_v5 }
 0x33f   :  { %v678_v7 = vsel %vm349_vm5, %v1536_v0, %v1537_v63  ;;  %v1420_v12 = vpack.c.bf16 %v1547_v8, %v1537_v63  ;;  %v679_v13 = vsel %vm349_vm5, %v1546_v9, %v1547_v8 }
 0x340   :  { %v1550_v6 = vpop.permute.xlu1 %1549  ;;  %v1560_v14 = vpop.permute.xlu0 %1559  ;;  %v1422_v15 = vpack.c.bf16 %v679_v13, %v678_v7  ;;  %v867_v7 = vld [vmem:[%s2525_s0] sm:$0xff] }
 0x341   :  { %v1552_v10 = vunpack.i.h.bf16 %v1550_v6  ;;  %v1551_v11 = vunpack.i.l.bf16 %v1550_v6  ;;  %v1562_v18 = vunpack.i.h.bf16 %v1560_v14  ;;  %v1561_v19 = vunpack.i.l.bf16 %v1560_v14  ;;  %1421 = vmatprep.subr.bf16.mxu1 %v1420_v12 }
 0x342   :  { %1423 = vmatpush1.bf16.msra.mxu1 %v1422_v15  ;;  %v868_v15 = vld [vmem:[%s2525_s0 + $0x8] sm:$0xff] }
 0x343   :  { %v680_v17 = vsel %vm349_vm5, %v1551_v11, %v1552_v10  ;;  %v1424_v22 = vpack.c.bf16 %v1562_v18, %v1552_v10  ;;  %v681_v23 = vsel %vm349_vm5, %v1561_v19, %v1562_v18 }
 0x344   :  { %v1555_v16 = vpop.permute.xlu1 %1554  ;;  %v1565_v24 = vpop.permute.xlu0 %1564  ;;  %v1426_v25 = vpack.c.bf16 %v681_v23, %v680_v17 }
 0x345   :  { %v1557_v20 = vunpack.i.h.bf16 %v1555_v16  ;;  %v1556_v21 = vunpack.i.l.bf16 %v1555_v16  ;;  %v1567_v28 = vunpack.i.h.bf16 %v1565_v24  ;;  %v1566_v29 = vunpack.i.l.bf16 %v1565_v24  ;;  %1425 = vmatprep.subr.bf16.mxu1 %v1424_v22  ;;  %v869_v22 = vld [vmem:[%s2525_s0 + $0x10] sm:$0xff] }
 0x346   :  { %1427 = vmatpush1.bf16.msra.mxu1 %v1426_v25 }
 0x347   :  { %v706_v27 = vsel %vm378_vm7, %v1556_v21, %v1557_v20  ;;  %v1428_v32 = vpack.c.bf16 %v1567_v28, %v1557_v20  ;;  %v707_v33 = vsel %vm378_vm7, %v1566_v29, %v1567_v28  ;;  %v870_v29 = vld [vmem:[%s2525_s0 + $0x18] sm:$0xff] }
 0x348   :  { %v1570_v26 = vpop.permute.xlu1 %1569  ;;  %v1575_v34 = vpop.permute.xlu0 %1574  ;;  %v1430_v35 = vpack.c.bf16 %v707_v33, %v706_v27 }
 0x349   :  { %v1572_v30 = vunpack.i.h.bf16 %v1570_v26  ;;  %v1571_v31 = vunpack.i.l.bf16 %v1570_v26  ;;  %v1577_v36 = vunpack.i.h.bf16 %v1575_v34  ;;  %v1576_v37 = vunpack.i.l.bf16 %v1575_v34  ;;  %1429 = vmatprep.subr.bf16.mxu1 %v1428_v32 }
 0x34a   :  { %1431 = vmatpush1.bf16.msra.mxu1 %v1430_v35 }
 0x34b   :  { %v708_v38 = vsel %vm378_vm7, %v1571_v31, %v1572_v30  ;;  %v1432_v39 = vpack.c.bf16 %v1577_v36, %v1572_v30  ;;  %v709_v40 = vsel %vm378_vm7, %v1576_v37, %v1577_v36 }
 0x34c   :  { %v1434_v41 = vpack.c.bf16 %v709_v40, %v708_v38 }
 0x34d   :  { %1433 = vmatprep.subr.bf16.mxu1 %v1432_v39 }
 0x34e   :  { %1435 = vmatpush1.bf16.msra.mxu1 %v1434_v41 }
 0x351   :  { %803 = vmatmul.mubr.f32.vlgmr.msra.gmra.mrb[0].mxu1 %v24_v42 }
 0x352   :  { %808 = vmatprep.mubr.f32.mxu1 %v1674_v2 }
 0x355   :  { %809 = vmatmul.mubr.f32.gmra.mrb[2].mxu1 %v25_v43 }
 0x356   :  { %814 = vmatprep.mubr.f32.mxu1 %v1674_v2 }
 0x359   :  { %815 = vmatmul.mubr.f32.gmra.mrb[4].mxu1 %v26_v44  ;;  %v721_v46 = vpop.permute.xlu1 %720  ;;  %v726_v52 = vpop.permute.xlu0 %725 }
 0x35a   :  { %820 = vmatprep.mubr.f32.mxu1 %v1674_v2 }
 0x35d   :  { %821 = vmatmul.mubr.f32.gmra.mrb[6].mxu1 %v27_v45  ;;  %v731_v2 = vpop.permute.xlu1 %730  ;;  %v2112_v62 = vpop.permute.xlu0 %735 }
 0x424   :  { %v804_v47 = vpop.f32.mrb[0].mxu1 }
 0x425   :  { %v805_v48 = vadd.f32 %v804_v47, %v721_v46  ;;  %v806_v49 = vpop.f32.mrb[1].mxu1 }
 0x426   :  { %v807_v50 = vadd.f32 %v806_v49, %v721_v46 }
 0x427   :  { %v835_v51 = vmul.f32 1.442695, %v805_v48  ;;  %vm827_vm0 = vcmp.gt.f32.partialorder %v805_v48, 0.0 }
 0x428   :  { %v837_v53 = vmul.f32 1.442695, %v807_v50  ;;  %v810_v54 = vpop.f32.mrb[2].mxu1  ;;  %vm828_vm2 = vcmp.gt.f32.partialorder %v807_v50, 0.0 }
 0x429   :  { %1594 = vpow2.f32 %v835_v51  ;;  %v811_v55 = vadd.f32 %v810_v54, %v726_v52  ;;  %v812_v56 = vpop.f32.mrb[3].mxu1 }
 0x42a   :  { %1596 = vpow2.f32 %v837_v53  ;;  %v2120_v10 = vadd.f32 %v812_v56, %v726_v52 }
 0x42b   :  { %v839_v57 = vmul.f32 1.442695, %v811_v55  ;;  %vm829_vm4 = vcmp.gt.f32.partialorder %v811_v55, 0.0 }
 0x42c   :  { %v816_v58 = vpop.f32.mrb[4].mxu1  ;;  %v841_v18 = vmul.f32 1.442695, %v2120_v10  ;;  %vm830_vm3 = vcmp.gt.f32.partialorder %v2120_v10, 0.0 }
 0x42d   :  { %1598 = vpow2.f32 %v839_v57  ;;  %v817_v59 = vadd.f32 %v816_v58, %v731_v2  ;;  %v818_v60 = vpop.f32.mrb[5].mxu1  ;;  %v1348_v58 = vld [vmem:[%s2525_s0 + $0xc0] sm:$0xff] }
 0x42e   :  { %v2142_v25 = vadd.f32 %v818_v60, %v731_v2 }
 0x42f   :  { %v843_v61 = vmul.f32 1.442695, %v817_v59  ;;  %vm831_vm6 = vcmp.gt.f32.partialorder %v817_v59, 0.0 }
 0x430   :  { %v822_v63 = vpop.f32.mrb[6].mxu1  ;;  %v845_v31 = vmul.f32 1.442695, %v2142_v25  ;;  %vm832_vm9 = vcmp.gt.f32.partialorder %v2142_v25, 0.0 }
 0x431   :  { %1600 = vpow2.f32 %v843_v61  ;;  %v823_v0 = vadd.f32 %v822_v63, %v2112_v62  ;;  %v2115_v1 = vpop.f32.mrb[7].mxu1  ;;  %v1288_v61 = vld [vmem:[%s2525_s0 + $0x20] sm:$0xff]  ;;  %v1289_v63 = vld [vmem:[%s2525_s0 + $0x28] sm:$0xff] }
 0x432   :  { %v825_v52 = vadd.f32 %v2115_v1, %v2112_v62 }
 0x433   :  { %v1595_v3 = vpop.eup %1594  ;;  %v847_v4 = vmul.f32 1.442695, %v823_v0  ;;  %vm833_vm8 = vcmp.gt.f32.partialorder %v823_v0, 0.0 }
 0x434   :  { %v1597_v5 = vpop.eup %1596  ;;  %v1276_v6 = vadd.f32 -1.0, %v1595_v3  ;;  %v849_v54 = vmul.f32 1.442695, %v825_v52  ;;  %vm834_vm11 = vcmp.gt.f32.partialorder %v825_v52, 0.0 }
 0x435   :  { %1602 = vpow2.f32 %v847_v4  ;;  %v1277_v8 = vadd.f32 -1.0, %v1597_v5 }
 0x436   :  { %v859_v9 = vsel %vm827_vm0, %v805_v48, %v1276_v6  ;;  %v1300_v6 = vld [vmem:[%s2525_s0 + $0x40] sm:$0xff] }
 0x437   :  { %v1599_v11 = vpop.eup %1598  ;;  %v871_v12 = vadd.f32 %v867_v7, %v859_v9  ;;  %1137 = vrot.lane.b32.xlu1 %v859_v9, %s1687_s22  ;;  %v2123_v13 = vsel %vm828_vm2, %v807_v50, %v1277_v8  ;;  %v1301_v8 = vld [vmem:[%s2525_s0 + $0x48] sm:$0xff] }
 0x438   :  { %v1278_v14 = vadd.f32 -1.0, %v1599_v11  ;;  %1139 = vrot.lane.b32.xlu0 %v2123_v13, %s1687_s22 }
 0x439   :  { %v879_v16 = vmul.f32 1.442695, %v871_v12  ;;  %vm875_vm12 = vcmp.gt.f32.partialorder %v871_v12, 0.0 }
 0x43a   :  { %v2130_v17 = vsel %vm829_vm4, %v811_v55, %v1278_v14  ;;  %v1312_v14 = vld [vmem:[%s2525_s0 + $0x60] sm:$0xff] }
 0x43b   :  { %v1601_v19 = vpop.eup %1600  ;;  %1604 = vpow2.f32 %v879_v16  ;;  %v872_v20 = vadd.f32 %v868_v15, %v2130_v17  ;;  %908 = vrot.lane.b32.xlu1 %v859_v9, %s1688_s2  ;;  %v1313_v16 = vld [vmem:[%s2525_s0 + $0x68] sm:$0xff] }
 0x43c   :  { %v1280_v21 = vadd.f32 -1.0, %v1601_v19  ;;  %910 = vrot.lane.b32.xlu0 %v2130_v17, %s1688_s2  ;;  %1606 = vpow2.f32 %v841_v18 }
 0x43d   :  { %v881_v23 = vmul.f32 1.442695, %v872_v20  ;;  %vm876_vm15 = vcmp.gt.f32.partialorder %v872_v20, 0.0 }
 0x43e   :  { %v2140_v24 = vsel %vm831_vm6, %v817_v59, %v1280_v21 }
 0x43f   :  { %v1603_v26 = vpop.eup %1602  ;;  %1608 = vpow2.f32 %v881_v23  ;;  %v873_v27 = vadd.f32 %v869_v22, %v2140_v24  ;;  %953 = vrot.lane.b32.xlu1 %v859_v9, %s1689_s7  ;;  %v1324_v22 = vld [vmem:[%s2525_s0 + $0x80] sm:$0xff] }
 0x440   :  { %v1282_v28 = vadd.f32 -1.0, %v1603_v26  ;;  %955 = vrot.lane.b32.xlu0 %v2130_v17, %s1689_s7 }
 0x441   :  { %v883_v30 = vmul.f32 1.442695, %v873_v27  ;;  %vm877_vm5 = vcmp.gt.f32.partialorder %v873_v27, 0.0 }
 0x442   :  { %v2152_v32 = vsel %vm833_vm8, %v823_v0, %v1282_v28 }
 0x443   :  { %1610 = vpow2.f32 %v883_v30  ;;  %v874_v33 = vadd.f32 %v870_v29, %v2152_v32  ;;  %998 = vrot.lane.b32.xlu1 %v859_v9, %s1690_s30 }
 0x444   :  { %1000 = vrot.lane.b32.xlu0 %v2130_v17, %s1690_s30  ;;  %1612 = vpow2.f32 %v845_v31 }
 0x445   :  { %v1605_v34 = vpop.eup %1604  ;;  %v885_v35 = vmul.f32 1.442695, %v874_v33  ;;  %vm878_vm7 = vcmp.gt.f32.partialorder %v874_v33, 0.0 }
 0x446   :  { %v1284_v36 = vadd.f32 -1.0, %v1605_v34  ;;  %v1607_v37 = vpop.eup %1606 }
 0x447   :  { %1614 = vpow2.f32 %v885_v35  ;;  %1043 = vrot.lane.b32.xlu1 %v859_v9, %s1691_s10  ;;  %v1279_v41 = vadd.f32 -1.0, %v1607_v37  ;;  %v1337_v35 = vld [vmem:[%s2525_s0 + $0xa8] sm:$0xff] }
 0x448   :  { %v891_v38 = vsel %vm875_vm12, %v871_v12, %v1284_v36  ;;  %1045 = vrot.lane.b32.xlu0 %v2130_v17, %s1691_s10  ;;  %1616 = vpow2.f32 %v849_v54 }
 0x449   :  { %v1609_v39 = vpop.eup %1608  ;;  %896 = vst.msk [vmem:[%s2530_s5] sm:$0xff] %vm895_vm10, %v891_v38  ;;  %v862_v45 = vsel %vm830_vm3, %v2120_v10, %v1279_v41 }
 0x44a   :  { %v1285_v40 = vadd.f32 -1.0, %v1609_v39 }
 0x44b   :  { %1088 = vrot.lane.b32.xlu1 %v859_v9, %s1692_s11 }
 0x44c   :  { %v892_v42 = vsel %vm876_vm15, %v872_v20, %v1285_v40  ;;  %1090 = vrot.lane.b32.xlu0 %v2130_v17, %s1692_s11 }
 0x44d   :  { %v1611_v43 = vpop.eup %1610  ;;  %897 = vst.msk [vmem:[%s2530_s5 + $0x8] sm:$0xff] %vm895_vm10, %v892_v42 }
 0x44e   :  { %v1286_v44 = vadd.f32 -1.0, %v1611_v43  ;;  %v1613_v46 = vpop.eup %1612 }
 0x44f   :  { %1195 = vrot.lane.b32.xlu1 %v2123_v13, %s1693_s15  ;;  %v1281_v50 = vadd.f32 -1.0, %v1613_v46  ;;  %v1360_v46 = vld [vmem:[%s2525_s0 + $0xe0] sm:$0xff] }
 0x450   :  { %v893_v47 = vsel %vm877_vm5, %v873_v27, %v1286_v44  ;;  %1143 = vrot.lane.b32.xlu0 %v862_v45, %s1687_s22 }
 0x451   :  { %v1615_v48 = vpop.eup %1614  ;;  %898 = vst.msk [vmem:[%s2530_s5 + $0x10] sm:$0xff] %vm895_vm10, %v893_v47  ;;  %v864_v53 = vsel %vm832_vm9, %v2142_v25, %v1281_v50 }
 0x452   :  { %v1287_v49 = vadd.f32 -1.0, %v1615_v48  ;;  %v1617_v55 = vpop.eup %1616 }
 0x453   :  { %1141 = vrot.lane.b32.xlu1 %v2130_v17, %s1687_s22  ;;  %v1283_v56 = vadd.f32 -1.0, %v1617_v55 }
 0x454   :  { %v894_v51 = vsel %vm878_vm7, %v874_v33, %v1287_v49  ;;  %1197 = vrot.lane.b32.xlu0 %v862_v45, %s1693_s15 }
 0x455   :  { %899 = vst.msk [vmem:[%s2530_s5 + $0x18] sm:$0xff] %vm895_vm10, %v894_v51  ;;  %v866_v57 = vsel %vm834_vm11, %v825_v52, %v1283_v56 }
 0x457   :  { %1145 = vrot.lane.b32.xlu1 %v2140_v24, %s1687_s22 }
 0x458   :  { %1147 = vrot.lane.b32.xlu0 %v864_v53, %s1687_s22 }
 0x45b   :  { %912 = vrot.lane.b32.xlu1 %v2140_v24, %s1688_s2 }
 0x45c   :  { %914 = vrot.lane.b32.xlu0 %v2152_v32, %s1688_s2 }
 0x45f   :  { %957 = vrot.lane.b32.xlu1 %v2140_v24, %s1689_s7 }
 0x460   :  { %959 = vrot.lane.b32.xlu0 %v2152_v32, %s1689_s7 }
 0x463   :  { %1002 = vrot.lane.b32.xlu1 %v2140_v24, %s1690_s30 }
 0x464   :  { %1004 = vrot.lane.b32.xlu0 %v2152_v32, %s1690_s30 }
 0x467   :  { %1047 = vrot.lane.b32.xlu1 %v2140_v24, %s1691_s10 }
 0x468   :  { %1049 = vrot.lane.b32.xlu0 %v2152_v32, %s1691_s10 }
 0x46b   :  { %1092 = vrot.lane.b32.xlu1 %v2140_v24, %s1692_s11  ;;  %v1325_v24 = vld [vmem:[%s2525_s0 + $0x88] sm:$0xff] }
 0x46c   :  { %1094 = vrot.lane.b32.xlu0 %v2152_v32, %s1692_s11 }
 0x46f   :  { %1149 = vrot.lane.b32.xlu1 %v2152_v32, %s1687_s22  ;;  %v1336_v32 = vld [vmem:[%s2525_s0 + $0xa0] sm:$0xff] }
 0x470   :  { %1151 = vrot.lane.b32.xlu0 %v866_v57, %s1687_s22 }
 0x473   :  { %1199 = vrot.lane.b32.xlu1 %v864_v53, %s1693_s15 }
 0x474   :  { %1201 = vrot.lane.b32.xlu0 %v866_v57, %s1693_s15 }
 0x4a9   :  { %v1138_v2 = vpop.permute.xlu1 %1137 }
 0x4aa   :  { %v1140_v59 = vpop.permute.xlu0 %1139 }
 0x4ab   :  { %v1154_v60 = vsel %vm1153_vm13, %v1138_v2, %v1140_v59 }
 0x4ac   :  { %v1162_v62 = vadd.f32 %v1348_v58, %v1154_v60  ;;  %v1349_v60 = vld [vmem:[%s2525_s0 + $0xc8] sm:$0xff] }
 0x4ad   :  { %v909_v0 = vpop.permute.xlu1 %908 }
 0x4ae   :  { %v1170_v1 = vmul.f32 1.442695, %v1162_v62  ;;  %v920_v3 = vadd.f32 %v1288_v61, %v909_v0  ;;  %v911_v4 = vpop.permute.xlu0 %910  ;;  %vm1166_vm14 = vcmp.gt.f32.partialorder %v1162_v62, 0.0  ;;  %v1361_v61 = vld [vmem:[%s2525_s0 + $0xe8] sm:$0xff] }
 0x4af   :  { %v921_v5 = vadd.f32 %v1289_v63, %v911_v4 }
 0x4b0   :  { %1618 = vpow2.f32 %v1170_v1  ;;  %v928_v7 = vmul.f32 1.442695, %v920_v3  ;;  %vm924_vm1 = vcmp.gt.f32.partialorder %v920_v3, 0.0 }
 0x4b1   :  { %v930_v9 = vmul.f32 1.442695, %v921_v5  ;;  %v954_v10 = vpop.permute.xlu1 %953  ;;  %vm925_vm0 = vcmp.gt.f32.partialorder %v921_v5, 0.0 }
 0x4b2   :  { %1620 = vpow2.f32 %v928_v7  ;;  %v965_v11 = vadd.f32 %v1300_v6, %v954_v10  ;;  %v956_v12 = vpop.permute.xlu0 %955 }
 0x4b3   :  { %1622 = vpow2.f32 %v930_v9  ;;  %v2236_v13 = vadd.f32 %v1301_v8, %v956_v12 }
 0x4b4   :  { %v973_v15 = vmul.f32 1.442695, %v965_v11  ;;  %vm969_vm2 = vcmp.gt.f32.partialorder %v965_v11, 0.0 }
 0x4b5   :  { %v975_v17 = vmul.f32 1.442695, %v2236_v13  ;;  %v999_v18 = vpop.permute.xlu1 %998  ;;  %vm970_vm4 = vcmp.gt.f32.partialorder %v2236_v13, 0.0 }
 0x4b6   :  { %1624 = vpow2.f32 %v973_v15  ;;  %v2245_v19 = vadd.f32 %v1312_v14, %v999_v18  ;;  %v1001_v20 = vpop.permute.xlu0 %1000  ;;  %v1350_v14 = vld [vmem:[%s2525_s0 + $0xd0] sm:$0xff] }
 0x4b7   :  { %1626 = vpow2.f32 %v975_v17  ;;  %v2247_v21 = vadd.f32 %v1313_v16, %v1001_v20  ;;  %v1290_v20 = vld [vmem:[%s2525_s0 + $0x30] sm:$0xff] }
 0x4b8   :  { %v1018_v23 = vmul.f32 1.442695, %v2245_v19  ;;  %vm1014_vm6 = vcmp.gt.f32.partialorder %v2245_v19, 0.0 }
 0x4b9   :  { %v1020_v25 = vmul.f32 1.442695, %v2247_v21  ;;  %v1044_v26 = vpop.permute.xlu1 %1043  ;;  %vm1015_vm8 = vcmp.gt.f32.partialorder %v2247_v21, 0.0 }
 0x4ba   :  { %v1619_v27 = vpop.eup %1618  ;;  %1628 = vpow2.f32 %v1018_v23  ;;  %v2257_v28 = vadd.f32 %v1324_v22, %v1044_v26  ;;  %v1046_v29 = vpop.permute.xlu0 %1045 }
 0x4bb   :  { %v1352_v30 = vadd.f32 -1.0, %v1619_v27  ;;  %1630 = vpow2.f32 %v1020_v25  ;;  %v2259_v31 = vadd.f32 %v1325_v24, %v1046_v29  ;;  %v1291_v24 = vld [vmem:[%s2525_s0 + $0x38] sm:$0xff] }
 0x4bc   :  { %v1621_v33 = vpop.eup %1620  ;;  %v1063_v34 = vmul.f32 1.442695, %v2257_v28  ;;  %vm1059_vm12 = vcmp.gt.f32.partialorder %v2257_v28, 0.0 }
 0x4bd   :  { %v1623_v36 = vpop.eup %1622  ;;  %v1182_v37 = vsel %vm1166_vm14, %v1162_v62, %v1352_v30  ;;  %v1292_v38 = vadd.f32 -1.0, %v1621_v33  ;;  %v1065_v39 = vmul.f32 1.442695, %v2259_v31  ;;  %v1089_v40 = vpop.permute.xlu1 %1088  ;;  %vm1060_vm15 = vcmp.gt.f32.partialorder %v2259_v31, 0.0 }
 0x4be   :  { %1356 = vst.msk [vmem:[%s2530_s5 + $0xc0] sm:$0xff] %vm895_vm10, %v1182_v37  ;;  %v1293_v41 = vadd.f32 -1.0, %v1623_v36  ;;  %1632 = vpow2.f32 %v1063_v34  ;;  %v2273_v42 = vadd.f32 %v1336_v32, %v1089_v40  ;;  %v1091_v43 = vpop.permute.xlu0 %1090  ;;  %v1302_v34 = vld [vmem:[%s2525_s0 + $0x50] sm:$0xff] }
 0x4bf   :  { %v940_v44 = vsel %vm924_vm1, %v920_v3, %v1292_v38  ;;  %1634 = vpow2.f32 %v1065_v39  ;;  %v2275_v45 = vadd.f32 %v1337_v35, %v1091_v43  ;;  %v1303_v38 = vld [vmem:[%s2525_s0 + $0x58] sm:$0xff] }
 0x4c0   :  { %v1625_v47 = vpop.eup %1624  ;;  %1296 = vst.msk [vmem:[%s2530_s5 + $0x20] sm:$0xff] %vm895_vm10, %v940_v44  ;;  %v941_v48 = vsel %vm925_vm0, %v921_v5, %v1293_v41  ;;  %v1108_v49 = vmul.f32 1.442695, %v2273_v42  ;;  %vm1104_vm3 = vcmp.gt.f32.partialorder %v2273_v42, 0.0 }
 0x4c1   :  { %v1627_v50 = vpop.eup %1626  ;;  %1297 = vst.msk [vmem:[%s2530_s5 + $0x28] sm:$0xff] %vm895_vm10, %v941_v48  ;;  %v1304_v51 = vadd.f32 -1.0, %v1625_v47  ;;  %v1110_v52 = vmul.f32 1.442695, %v2275_v45  ;;  %v1196_v53 = vpop.permute.xlu1 %1195  ;;  %vm1105_vm5 = vcmp.gt.f32.partialorder %v2275_v45, 0.0  ;;  %v1315_v48 = vld [vmem:[%s2525_s0 + $0x78] sm:$0xff] }
 0x4c2   :  { %v1305_v54 = vadd.f32 -1.0, %v1627_v50  ;;  %1636 = vpow2.f32 %v1108_v49  ;;  %v2290_v55 = vadd.f32 %v1360_v46, %v1196_v53  ;;  %v1144_v56 = vpop.permute.xlu0 %1143  ;;  %v1314_v46 = vld [vmem:[%s2525_s0 + $0x70] sm:$0xff] }
 0x4c3   :  { %v985_v57 = vsel %vm969_vm2, %v965_v11, %v1304_v51  ;;  %1638 = vpow2.f32 %v1110_v52 }
 0x4c4   :  { %v1629_v2 = vpop.eup %1628  ;;  %1308 = vst.msk [vmem:[%s2530_s5 + $0x40] sm:$0xff] %vm895_vm10, %v985_v57  ;;  %v986_v58 = vsel %vm970_vm4, %v2236_v13, %v1305_v54  ;;  %v1215_v59 = vmul.f32 1.442695, %v2290_v55  ;;  %vm1211_vm7 = vcmp.gt.f32.partialorder %v2290_v55, 0.0 }
 0x4c5   :  { %v1631_v62 = vpop.eup %1630  ;;  %1309 = vst.msk [vmem:[%s2530_s5 + $0x48] sm:$0xff] %vm895_vm10, %v986_v58  ;;  %v1316_v63 = vadd.f32 -1.0, %v1629_v2  ;;  %v1142_v0 = vpop.permute.xlu1 %1141  ;;  %v1326_v2 = vld [vmem:[%s2525_s0 + $0x90] sm:$0xff] }
 0x4c6   :  { %v1317_v1 = vadd.f32 -1.0, %v1631_v62  ;;  %1640 = vpow2.f32 %v1215_v59  ;;  %v1155_v3 = vsel %vm1153_vm13, %v1142_v0, %v1144_v56  ;;  %v1198_v4 = vpop.permute.xlu0 %1197 }
 0x4c7   :  { %v1030_v5 = vsel %vm1014_vm6, %v2245_v19, %v1316_v63  ;;  %v2313_v6 = vadd.f32 %v1349_v60, %v1155_v3  ;;  %v2315_v7 = vadd.f32 %v1361_v61, %v1198_v4  ;;  %v1327_v60 = vld [vmem:[%s2525_s0 + $0x98] sm:$0xff] }
 0x4c8   :  { %v1633_v8 = vpop.eup %1632  ;;  %1320 = vst.msk [vmem:[%s2530_s5 + $0x60] sm:$0xff] %vm895_vm10, %v1030_v5  ;;  %v1031_v9 = vsel %vm1015_vm8, %v2247_v21, %v1317_v1 }
 0x4c9   :  { %v1635_v10 = vpop.eup %1634  ;;  %1321 = vst.msk [vmem:[%s2530_s5 + $0x68] sm:$0xff] %vm895_vm10, %v1031_v9  ;;  %v1328_v11 = vadd.f32 -1.0, %v1633_v8  ;;  %v1172_v12 = vmul.f32 1.442695, %v2313_v6  ;;  %v1146_v13 = vpop.permute.xlu1 %1145  ;;  %v1217_v16 = vmul.f32 1.442695, %v2315_v7 }
 0x4ca   :  { %v1329_v15 = vadd.f32 -1.0, %v1635_v10  ;;  %v1148_v17 = vpop.permute.xlu0 %1147  ;;  %vm1167_vm9 = vcmp.gt.f32.partialorder %v2313_v6, 0.0  ;;  %vm1212_vm11 = vcmp.gt.f32.partialorder %v2315_v7, 0.0  ;;  %v1339_v9 = vld [vmem:[%s2525_s0 + $0xb8] sm:$0xff] }
 0x4cb   :  { %v1075_v18 = vsel %vm1059_vm12, %v2257_v28, %v1328_v11  ;;  %1642 = vpow2.f32 %v1172_v12  ;;  %v1156_v19 = vsel %vm1153_vm13, %v1146_v13, %v1148_v17 }
 0x4cc   :  { %v1637_v21 = vpop.eup %1636  ;;  %1332 = vst.msk [vmem:[%s2530_s5 + $0x80] sm:$0xff] %vm895_vm10, %v1075_v18  ;;  %v1076_v22 = vsel %vm1060_vm15, %v2259_v31, %v1329_v15  ;;  %1644 = vpow2.f32 %v1217_v16  ;;  %v2343_v23 = vadd.f32 %v1350_v14, %v1156_v19 }
 0x4cd   :  { %v1639_v25 = vpop.eup %1638  ;;  %1333 = vst.msk [vmem:[%s2530_s5 + $0x88] sm:$0xff] %vm895_vm10, %v1076_v22  ;;  %v1340_v26 = vadd.f32 -1.0, %v1637_v21  ;;  %v913_v27 = vpop.permute.xlu1 %912 }
 0x4ce   :  { %v1341_v28 = vadd.f32 -1.0, %v1639_v25  ;;  %v1174_v29 = vmul.f32 1.442695, %v2343_v23  ;;  %v2354_v30 = vadd.f32 %v1290_v20, %v913_v27  ;;  %v915_v31 = vpop.permute.xlu0 %914  ;;  %vm1168_vm14 = vcmp.gt.f32.partialorder %v2343_v23, 0.0  ;;  %v1351_v27 = vld [vmem:[%s2525_s0 + $0xd8] sm:$0xff] }
 0x4cf   :  { %v1120_v32 = vsel %vm1104_vm3, %v2273_v42, %v1340_v26  ;;  %v2358_v33 = vadd.f32 %v1291_v24, %v915_v31 }
 0x4d0   :  { %v1641_v35 = vpop.eup %1640  ;;  %1344 = vst.msk [vmem:[%s2530_s5 + $0xa0] sm:$0xff] %vm895_vm10, %v1120_v32  ;;  %v1121_v36 = vsel %vm1105_vm5, %v2275_v45, %v1341_v28  ;;  %1646 = vpow2.f32 %v1174_v29  ;;  %v932_v37 = vmul.f32 1.442695, %v2354_v30  ;;  %vm926_vm1 = vcmp.gt.f32.partialorder %v2354_v30, 0.0  ;;  %v1362_v32 = vld [vmem:[%s2525_s0 + $0xf0] sm:$0xff] }
 0x4d1   :  { %1345 = vst.msk [vmem:[%s2530_s5 + $0xa8] sm:$0xff] %vm895_vm10, %v1121_v36  ;;  %v1364_v39 = vadd.f32 -1.0, %v1641_v35  ;;  %v934_v40 = vmul.f32 1.442695, %v2358_v33  ;;  %v958_v41 = vpop.permute.xlu1 %957  ;;  %vm927_vm0 = vcmp.gt.f32.partialorder %v2358_v33, 0.0  ;;  %v1363_v36 = vld [vmem:[%s2525_s0 + $0xf8] sm:$0xff] }
 0x4d2   :  { %1648 = vpow2.f32 %v932_v37  ;;  %v2378_v42 = vadd.f32 %v1302_v34, %v958_v41  ;;  %v960_v43 = vpop.permute.xlu0 %959 }
 0x4d3   :  { %v1227_v44 = vsel %vm1211_vm7, %v2290_v55, %v1364_v39  ;;  %1650 = vpow2.f32 %v934_v40  ;;  %v2381_v45 = vadd.f32 %v1303_v38, %v960_v43 }
 0x4d4   :  { %1368 = vst.msk [vmem:[%s2530_s5 + $0xe0] sm:$0xff] %vm895_vm10, %v1227_v44  ;;  %v977_v47 = vmul.f32 1.442695, %v2378_v42  ;;  %vm971_vm2 = vcmp.gt.f32.partialorder %v2378_v42, 0.0 }
 0x4d5   :  { %v1643_v49 = vpop.eup %1642  ;;  %v979_v50 = vmul.f32 1.442695, %v2381_v45  ;;  %v1003_v51 = vpop.permute.xlu1 %1002  ;;  %vm972_vm4 = vcmp.gt.f32.partialorder %v2381_v45, 0.0 }
 0x4d6   :  { %v1645_v52 = vpop.eup %1644  ;;  %v1353_v53 = vadd.f32 -1.0, %v1643_v49  ;;  %1652 = vpow2.f32 %v977_v47  ;;  %v2395_v54 = vadd.f32 %v1314_v46, %v1003_v51  ;;  %v1005_v55 = vpop.permute.xlu0 %1004 }
 0x4d7   :  { %v1365_v56 = vadd.f32 -1.0, %v1645_v52  ;;  %1654 = vpow2.f32 %v979_v50  ;;  %v2398_v57 = vadd.f32 %v1315_v48, %v1005_v55 }
 0x4d8   :  { %v1183_v58 = vsel %vm1167_vm9, %v2313_v6, %v1353_v53  ;;  %v1022_v59 = vmul.f32 1.442695, %v2395_v54  ;;  %v1338_v6 = vld [vmem:[%s2525_s0 + $0xb0] sm:$0xff] }
 0x4d9   :  { %1357 = vst.msk [vmem:[%s2530_s5 + $0xc8] sm:$0xff] %vm895_vm10, %v1183_v58  ;;  %v1228_v61 = vsel %vm1212_vm11, %v2315_v7, %v1365_v56  ;;  %v1024_v62 = vmul.f32 1.442695, %v2398_v57  ;;  %v1048_v63 = vpop.permute.xlu1 %1047  ;;  %vm1017_vm6 = vcmp.gt.f32.partialorder %v2398_v57, 0.0 }
 0x4da   :  { %v1647_v0 = vpop.eup %1646  ;;  %1369 = vst.msk [vmem:[%s2530_s5 + $0xe8] sm:$0xff] %vm895_vm10, %v1228_v61  ;;  %1656 = vpow2.f32 %v1022_v59  ;;  %v2419_v1 = vadd.f32 %v1326_v2, %v1048_v63  ;;  %v1050_v3 = vpop.permute.xlu0 %1049 }
 0x4db   :  { %v1354_v4 = vadd.f32 -1.0, %v1647_v0  ;;  %1658 = vpow2.f32 %v1024_v62  ;;  %v2421_v5 = vadd.f32 %v1327_v60, %v1050_v3 }
 0x4dc   :  { %v1649_v7 = vpop.eup %1648  ;;  %v1067_v8 = vmul.f32 1.442695, %v2419_v1  ;;  %vm1061_vm8 = vcmp.gt.f32.partialorder %v2419_v1, 0.0 }
 0x4dd   :  { %v1651_v10 = vpop.eup %1650  ;;  %v1184_v11 = vsel %vm1168_vm14, %v2343_v23, %v1354_v4  ;;  %v1294_v12 = vadd.f32 -1.0, %v1649_v7  ;;  %v1069_v13 = vmul.f32 1.442695, %v2421_v5  ;;  %v1093_v14 = vpop.permute.xlu1 %1092  ;;  %vm1062_vm12 = vcmp.gt.f32.partialorder %v2421_v5, 0.0 }
 0x4de   :  { %1358 = vst.msk [vmem:[%s2530_s5 + $0xd0] sm:$0xff] %vm895_vm10, %v1184_v11  ;;  %v1295_v15 = vadd.f32 -1.0, %v1651_v10  ;;  %1660 = vpow2.f32 %v1067_v8  ;;  %v2438_v16 = vadd.f32 %v1338_v6, %v1093_v14  ;;  %v1095_v17 = vpop.permute.xlu0 %1094 }
 0x4df   :  { %v942_v18 = vsel %vm926_vm1, %v2354_v30, %v1294_v12  ;;  %1662 = vpow2.f32 %v1069_v13  ;;  %v2442_v19 = vadd.f32 %v1339_v9, %v1095_v17 }
 0x4e0   :  { %v1653_v20 = vpop.eup %1652  ;;  %1298 = vst.msk [vmem:[%s2530_s5 + $0x30] sm:$0xff] %vm895_vm10, %v942_v18  ;;  %v943_v21 = vsel %vm927_vm0, %v2358_v33, %v1295_v15  ;;  %v1112_v22 = vmul.f32 1.442695, %v2438_v16  ;;  %vm1106_vm15 = vcmp.gt.f32.partialorder %v2438_v16, 0.0 }
 0x4e1   :  { %v1655_v23 = vpop.eup %1654  ;;  %1299 = vst.msk [vmem:[%s2530_s5 + $0x38] sm:$0xff] %vm895_vm10, %v943_v21  ;;  %v1306_v24 = vadd.f32 -1.0, %v1653_v20  ;;  %v1114_v25 = vmul.f32 1.442695, %v2442_v19  ;;  %v1150_v26 = vpop.permute.xlu1 %1149  ;;  %vm1107_vm3 = vcmp.gt.f32.partialorder %v2442_v19, 0.0 }
 0x4e2   :  { %v1307_v28 = vadd.f32 -1.0, %v1655_v23  ;;  %1664 = vpow2.f32 %v1112_v22  ;;  %v1152_v29 = vpop.permute.xlu0 %1151 }
 0x4e3   :  { %v987_v30 = vsel %vm971_vm2, %v2378_v42, %v1306_v24  ;;  %1666 = vpow2.f32 %v1114_v25  ;;  %v1157_v31 = vsel %vm1153_vm13, %v1150_v26, %v1152_v29  ;;  %vm1016_vm13 = vcmp.gt.f32.partialorder %v2395_v54, 0.0 }
 0x4e4   :  { %v1657_v33 = vpop.eup %1656  ;;  %1310 = vst.msk [vmem:[%s2530_s5 + $0x50] sm:$0xff] %vm895_vm10, %v987_v30  ;;  %v988_v34 = vsel %vm972_vm4, %v2381_v45, %v1307_v28  ;;  %v1165_v35 = vadd.f32 %v1351_v27, %v1157_v31 }
 0x4e5   :  { %v1659_v37 = vpop.eup %1658  ;;  %1311 = vst.msk [vmem:[%s2530_s5 + $0x58] sm:$0xff] %vm895_vm10, %v988_v34  ;;  %v1318_v38 = vadd.f32 -1.0, %v1657_v33  ;;  %v1200_v39 = vpop.permute.xlu1 %1199 }
 0x4e6   :  { %v1319_v40 = vadd.f32 -1.0, %v1659_v37  ;;  %v1176_v41 = vmul.f32 1.442695, %v1165_v35  ;;  %v1209_v42 = vadd.f32 %v1362_v32, %v1200_v39  ;;  %v1202_v43 = vpop.permute.xlu0 %1201  ;;  %vm1169_vm5 = vcmp.gt.f32.partialorder %v1165_v35, 0.0 }
 0x4e7   :  { %v1032_v44 = vsel %vm1016_vm13, %v2395_v54, %v1318_v38  ;;  %v1210_v45 = vadd.f32 %v1363_v36, %v1202_v43 }
 0x4e8   :  { %v1661_v46 = vpop.eup %1660  ;;  %1322 = vst.msk [vmem:[%s2530_s5 + $0x70] sm:$0xff] %vm895_vm10, %v1032_v44  ;;  %v1033_v47 = vsel %vm1017_vm6, %v2398_v57, %v1319_v40  ;;  %1668 = vpow2.f32 %v1176_v41  ;;  %v1219_v48 = vmul.f32 1.442695, %v1209_v42  ;;  %vm1213_vm7 = vcmp.gt.f32.partialorder %v1209_v42, 0.0 }
 0x4e9   :  { %v1663_v49 = vpop.eup %1662  ;;  %1323 = vst.msk [vmem:[%s2530_s5 + $0x78] sm:$0xff] %vm895_vm10, %v1033_v47  ;;  %v1330_v50 = vadd.f32 -1.0, %v1661_v46  ;;  %v1221_v51 = vmul.f32 1.442695, %v1210_v45  ;;  %vm1214_vm9 = vcmp.gt.f32.partialorder %v1210_v45, 0.0 }
 0x4ea   :  { %v1331_v52 = vadd.f32 -1.0, %v1663_v49  ;;  %1670 = vpow2.f32 %v1219_v48 }
 0x4eb   :  { %v1077_v53 = vsel %vm1061_vm8, %v2419_v1, %v1330_v50  ;;  %1672 = vpow2.f32 %v1221_v51 }
 0x4ec   :  { %v1665_v54 = vpop.eup %1664  ;;  %1334 = vst.msk [vmem:[%s2530_s5 + $0x90] sm:$0xff] %vm895_vm10, %v1077_v53  ;;  %v1078_v55 = vsel %vm1062_vm12, %v2421_v5, %v1331_v52 }
 0x4ed   :  { %v1667_v56 = vpop.eup %1666  ;;  %1335 = vst.msk [vmem:[%s2530_s5 + $0x98] sm:$0xff] %vm895_vm10, %v1078_v55  ;;  %v1342_v57 = vadd.f32 -1.0, %v1665_v54 }
 0x4ee   :  { %v1343_v2 = vadd.f32 -1.0, %v1667_v56 }
 0x4ef   :  { %v1122_v58 = vsel %vm1106_vm15, %v2438_v16, %v1342_v57 }
 0x4f0   :  { %1346 = vst.msk [vmem:[%s2530_s5 + $0xb0] sm:$0xff] %vm895_vm10, %v1122_v58  ;;  %v1123_v59 = vsel %vm1107_vm3, %v2442_v19, %v1343_v2 }
 0x4f1   :  { %1347 = vst.msk [vmem:[%s2530_s5 + $0xb8] sm:$0xff] %vm895_vm10, %v1123_v59 }
 0x4f2   :  { %v1669_v60 = vpop.eup %1668 }
 0x4f3   :  { %v1355_v61 = vadd.f32 -1.0, %v1669_v60 }
 0x4f4   :  { %v1671_v62 = vpop.eup %1670 }
 0x4f5   :  { %v1673_v63 = vpop.eup %1672  ;;  %v1185_v0 = vsel %vm1169_vm5, %v1165_v35, %v1355_v61  ;;  %v1366_v1 = vadd.f32 -1.0, %v1671_v62 }
 0x4f6   :  { %1359 = vst.msk [vmem:[%s2530_s5 + $0xd8] sm:$0xff] %vm895_vm10, %v1185_v0  ;;  %v1367_v3 = vadd.f32 -1.0, %v1673_v63 }
 0x4f7   :  { %v1229_v4 = vsel %vm1213_vm7, %v1209_v42, %v1366_v1 }
 0x4f8   :  { %1370 = vst.msk [vmem:[%s2530_s5 + $0xf0] sm:$0xff] %vm895_vm10, %v1229_v4  ;;  %v1230_v5 = vsel %vm1214_vm9, %v1210_v45, %v1367_v3 }
 0x4f9   :  { %1371 = vst.msk [vmem:[%s2530_s5 + $0xf8] sm:$0xff] %vm895_vm10, %v1230_v5 }

</bundles_post_ra>
